<compile_context>
chip_gen: v7x
topology: tpu7x:2x2x1
jax: 0.10.0
libtpu: 0.0.40
codegen_flags: <defaults>
</compile_context>

<pallas_src>
import numpy as np
import jax
import jax.numpy as jnp
from jax.experimental import pallas as pl
from jax.experimental.pallas import tpu as pltpu

EPS = 1e-5
LANE = 128


def _round_up(x, m):
    return ((x + m - 1) // m) * m


# ----------------------------- kernel bodies ---------------------------------
def _write_stats(st_ref, y):
    # Per-image two-pass statistics (mean and sum of squared deviations) of the
    # raw conv output; combined exactly across images in the wrapper.
    c = y.shape[1]
    m = jnp.mean(y, axis=0, keepdims=True)
    m2 = jnp.sum((y - m) ** 2, axis=0, keepdims=True)
    st_ref[:, 0:1, :] = m.reshape(1, 1, c)
    st_ref[:, 1:2, :] = m2.reshape(1, 1, c)


def conv1_kernel(x_ref, w_ref, y_ref, st_ref):
    # 1x1 conv (matmul) + per-image BN1 statistics.  Input is cast to bf16 only
    # at the dot; no f32 copy is kept live.
    _, H, W, Cin = x_ref.shape
    P = H * W
    x2d = x_ref[...].reshape(P, Cin).astype(jnp.bfloat16)
    y = jnp.dot(x2d, w_ref[...], preferred_element_type=jnp.float32)
    y_ref[...] = y.reshape(1, H, W, -1)
    _write_stats(st_ref, y)


def conv2_kernel(y1_ref, s_ref, t_ref, w2_ref, y2_ref, st_ref):
    # folded-BN1 (y*scale+shift) + relu + 3x3 conv as ONE im2col matmul
    # (K = 9*C) + per-image BN2 statistics.
    _, H, W, C = y1_ref.shape
    P = H * W
    h = jnp.maximum(y1_ref[...].reshape(P, C) * s_ref[...] + t_ref[...], 0.0)

    # Zero-pad two pixel-rows of H at top/bottom in the flattened (pixel, C)
    # view; pieces are whole pixel-rows so no halo stores are needed at all.
    zpad = jnp.zeros((2 * W, C), jnp.float32)
    hp = jnp.concatenate([zpad, h, zpad], axis=0)           # ((H+4)*W, C)

    P2 = (H + 2) * W
    wcol = jax.lax.broadcasted_iota(jnp.int32, (P2, C), 0) % W

    # dx (width) shifts realised as flat row-offset slices; the pixels that
    # wrap across an image row are masked to zero (edge columns).  Cast to
    # bf16 once per dx (3 small casts), before building the 9 slabs.
    shifted = []
    for dx in range(3):
        s = hp[W + dx - 1: W + dx - 1 + P2, :]
        if dx == 0:
            s = jnp.where(wcol > 0, s, 0.0)
        elif dx == 2:
            s = jnp.where(wcol < W - 1, s, 0.0)
        shifted.append(s.astype(jnp.bfloat16))

    # dy (height) shifts are dy*W row offsets of the already-cast slabs; the
    # 9 slabs are concatenated on the lane axis at 128-aligned boundaries so
    # the single dot sees K = 9*C.
    slabs = [shifted[dx][dy * W: dy * W + P, :]
             for dy in range(3) for dx in range(3)]
    patch = jnp.concatenate(slabs, axis=-1)                 # (P, 9C) bf16
    y2 = jnp.dot(patch, w2_ref[...], preferred_element_type=jnp.float32)

    y2_ref[...] = y2.reshape(1, H, W, C)
    _write_stats(st_ref, y2)


def conv3_kernel(y2_ref, s_ref, t_ref, w_ref, y3_ref, st_ref):
    # folded-BN2 + relu + 1x1 conv + per-image BN3 statistics.
    _, H, W, C = y2_ref.shape
    P = H * W
    h = jnp.maximum(y2_ref[...].reshape(P, C) * s_ref[...] + t_ref[...], 0.0)
    y3 = jnp.dot(h.astype(jnp.bfloat16), w_ref[...],
                 preferred_element_type=jnp.float32)
    y3_ref[...] = y3.reshape(1, H, W, -1)
    _write_stats(st_ref, y3)


def bn_add_relu_kernel(y3_ref, s_ref, t_ref, x_ref, o_ref):
    # folded-BN3 + identity residual + relu (identity re-read fresh from HBM).
    o_ref[...] = jnp.maximum(
        y3_ref[...] * s_ref[...] + t_ref[...] + x_ref[...], 0.0)


# ------------------------------ host wrapper ----------------------------------
def _fold_bn(stats, gamma, beta, pix_per_block):
    # Combine per-image (mean, M2) exactly (parallel two-pass variance), then
    # fold BN into a per-channel scale/shift.
    m_b = stats[:, 0, :]                     # (B, C)
    m2_b = stats[:, 1, :]                    # (B, C)
    nblk = stats.shape[0]
    mean = jnp.mean(m_b, axis=0, keepdims=True)
    m2 = (jnp.sum(m2_b, axis=0, keepdims=True)
          + pix_per_block * jnp.sum((m_b - mean) ** 2, axis=0, keepdims=True))
    var = m2 / (pix_per_block * nblk)
    scale = gamma * jax.lax.rsqrt(var + EPS)
    shift = beta - mean * scale
    return scale.astype(jnp.float32), shift.astype(jnp.float32)


def bottleneck_pallas(x_nchw, params):
    N, Cin, H, W = x_nchw.shape
    width = params["w1"].shape[1]
    Cout = params["w3"].shape[1]
    assert Cin == Cout, "identity residual requires in_channel == out_channel*expansion"

    Cin_p = _round_up(Cin, LANE)
    Wd_p = _round_up(width, LANE)
    Cout_p = _round_up(Cout, LANE)
    assert Cin_p == Cout_p

    x_nhwc = jnp.transpose(x_nchw, (0, 2, 3, 1)).astype(jnp.float32)
    x_p = jnp.pad(x_nhwc, ((0, 0), (0, 0), (0, 0), (0, Cin_p - Cin)))

    w1 = jnp.pad(params["w1"],
                 ((0, Cin_p - Cin), (0, Wd_p - width))).astype(jnp.bfloat16)
    w2 = jnp.pad(params["w2"],
                 ((0, 0), (0, 0), (0, Wd_p - width), (0, Wd_p - width)))
    w2 = w2.reshape(9 * Wd_p, Wd_p).astype(jnp.bfloat16)   # (dy, dx, cin) im2col rows
    w3 = jnp.pad(params["w3"],
                 ((0, Wd_p - width), (0, Cout_p - Cout))).astype(jnp.bfloat16)

    def pad_gb(g, b, cp):
        c = g.shape[1]
        return (jnp.pad(g, ((0, 0), (0, cp - c)), constant_values=1.0),
                jnp.pad(b, ((0, 0), (0, cp - c))))

    g1, b1 = pad_gb(params["g1"], params["b1"], Wd_p)
    g2, b2 = pad_gb(params["g2"], params["b2"], Wd_p)
    g3, b3 = pad_gb(params["g3"], params["b3"], Cout_p)

    P = H * W
    cparams = pltpu.CompilerParams(
        dimension_semantics=("parallel",),      # v7x: shard images across 2 TCs
        vmem_limit_bytes=48 * 1024 * 1024)      # valid on v5e/v6e/v7x; per-image blocks are small

    def img_spec(c):
        return pl.BlockSpec((1, H, W, c), lambda b: (b, 0, 0, 0))

    def vec_spec(c):
        return pl.BlockSpec((1, c), lambda b: (0, 0))

    def mat_spec(r, c):
        return pl.BlockSpec((r, c), lambda b: (0, 0))

    def stats_spec(c):
        return pl.BlockSpec((1, 2, c), lambda b: (b, 0, 0))

    def call(kernel, in_specs, out_specs, out_shape, *args):
        return pl.pallas_call(
            kernel, grid=(N,), in_specs=in_specs, out_specs=out_specs,
            out_shape=out_shape, compiler_params=cparams)(*args)

    # ---- stage 1: conv1 (1x1) + per-image BN1 statistics ---------------------
    y1, st1 = call(
        conv1_kernel,
        [img_spec(Cin_p), mat_spec(Cin_p, Wd_p)],
        [img_spec(Wd_p), stats_spec(Wd_p)],
        [jax.ShapeDtypeStruct((N, H, W, Wd_p), jnp.float32),
         jax.ShapeDtypeStruct((N, 2, Wd_p), jnp.float32)],
        x_p, w1)
    s1, t1 = _fold_bn(st1, g1, b1, P)

    # ---- stage 2: bn1 + relu + conv2 (3x3 im2col) + BN2 statistics -----------
    y2, st2 = call(
        conv2_kernel,
        [img_spec(Wd_p), vec_spec(Wd_p), vec_spec(Wd_p), mat_spec(9 * Wd_p, Wd_p)],
        [img_spec(Wd_p), stats_spec(Wd_p)],
        [jax.ShapeDtypeStruct((N, H, W, Wd_p), jnp.float32),
         jax.ShapeDtypeStruct((N, 2, Wd_p), jnp.float32)],
        y1, s1, t1, w2)
    s2, t2 = _fold_bn(st2, g2, b2, P)

    # ---- stage 3: bn2 + relu + conv3 (1x1) + BN3 statistics -------------------
    y3, st3 = call(
        conv3_kernel,
        [img_spec(Wd_p), vec_spec(Wd_p), vec_spec(Wd_p), mat_spec(Wd_p, Cout_p)],
        [img_spec(Cout_p), stats_spec(Cout_p)],
        [jax.ShapeDtypeStruct((N, H, W, Cout_p), jnp.float32),
         jax.ShapeDtypeStruct((N, 2, Cout_p), jnp.float32)],
        y2, s2, t2, w3)
    s3, t3 = _fold_bn(st3, g3, b3, P)

    # ---- stage 4: bn3 + identity add + relu -----------------------------------
    out_nhwc = call(
        bn_add_relu_kernel,
        [img_spec(Cout_p), vec_spec(Cout_p), vec_spec(Cout_p), img_spec(Cin_p)],
        img_spec(Cout_p),
        jax.ShapeDtypeStruct((N, H, W, Cout_p), jnp.float32),
        y3, s3, t3, x_p)

    return jnp.transpose(out_nhwc[..., :Cout], (0, 3, 1, 2))   # back to NCHW


# ----------------------- pure-JAX reference (for checking) -------------------
def _bn_ref(y, g, b):
    m = jnp.mean(y, axis=(0, 1, 2), keepdims=True)
    v = jnp.mean((y - m) ** 2, axis=(0, 1, 2), keepdims=True)
    return (y - m) * jax.lax.rsqrt(v + EPS) * g.reshape(1, 1, 1, -1) + b.reshape(1, 1, 1, -1)


def bottleneck_ref(x_nchw, params):
    x = jnp.transpose(x_nchw, (0, 2, 3, 1)).astype(jnp.float32)  # NHWC
    Cin = x.shape[-1]
    width = params["w1"].shape[1]

    def conv(inp, w_hwio, padding):
        return jax.lax.conv_general_dilated(
            inp, w_hwio, window_strides=(1, 1), padding=padding,
            dimension_numbers=("NHWC", "HWIO", "NHWC"))

    y1 = conv(x, params["w1"].reshape(1, 1, Cin, width), "VALID")
    y1 = jnp.maximum(_bn_ref(y1, params["g1"][0], params["b1"][0]), 0.0)
    y2 = conv(y1, params["w2"], "SAME")
    y2 = jnp.maximum(_bn_ref(y2, params["g2"][0], params["b2"][0]), 0.0)
    y3 = conv(y2, params["w3"].reshape(1, 1, width, params["w3"].shape[1]), "VALID")
    y3 = _bn_ref(y3, params["g3"][0], params["b3"][0]) + x
    y3 = jnp.maximum(y3, 0.0)
    return jnp.transpose(y3, (0, 3, 1, 2))


if __name__ == "__main__":
    key = jax.random.PRNGKey(0)
    # in_channel must equal out_channel*expansion for the identity add (downsample=None)
    N, H, W = 2, 8, 8
    out_channel = 8
    in_channel = out_channel * 4                      # 32
    width = int(out_channel * (64 / 64.0)) * 1        # groups=1, width_per_group=64 -> 8
    Cout = out_channel * 4                            # 32

    k0, k1, k2, k3 = jax.random.split(key, 4)
    # parameters in PyTorch (OIHW) layout, created deterministically
    conv1_w = jax.random.normal(k0, (width, in_channel, 1, 1), jnp.float32) * 0.1
    conv2_w = jax.random.normal(k1, (width, width, 3, 3), jnp.float32) * 0.1
    conv3_w = jax.random.normal(k2, (Cout, width, 1, 1), jnp.float32) * 0.1
    x_nchw = jax.random.normal(k3, (N, in_channel, H, W), jnp.float32)

    params = dict(
        w1=jnp.transpose(conv1_w[:, :, 0, 0], (1, 0)),   # (Cin, width)
        w2=jnp.transpose(conv2_w, (2, 3, 1, 0)),         # (kh, kw, cin, cout) HWIO
        w3=jnp.transpose(conv3_w[:, :, 0, 0], (1, 0)),   # (width, Cout)
        g1=jnp.ones((1, width), jnp.float32), b1=jnp.zeros((1, width), jnp.float32),
        g2=jnp.ones((1, width), jnp.float32), b2=jnp.zeros((1, width), jnp.float32),
        g3=jnp.ones((1, Cout), jnp.float32), b3=jnp.zeros((1, Cout), jnp.float32),
    )

    fwd = jax.jit(bottleneck_pallas)
    out = jax.block_until_ready(fwd(x_nchw, params))
    assert out.shape == (N, Cout, H, W)

    ref = jax.block_until_ready(bottleneck_ref(x_nchw, params))
    # bf16 MXU operands (f32 accumulation) -> compare with bf16-level tolerance
    np.testing.assert_allclose(np.asarray(out), np.asarray(ref), atol=2e-2, rtol=2e-2)

    print("KERNEL_OK")
</pallas_src>

<mosaic_0001>
module attributes {stable_mosaic.version = 11 : i64} {
  func.func @conv1_kernel(%arg0: i32, %arg1: memref<1x8x8x128xf32, #tpu.memory_space<vmem>>, %arg2: memref<128x128xbf16, #tpu.memory_space<vmem>>, %arg3: memref<1x8x8x128xf32, #tpu.memory_space<vmem>>, %arg4: memref<1x2x128xf32, #tpu.memory_space<vmem>>) attributes {dimension_semantics = [#tpu.dimension_semantics<parallel>], iteration_bounds = array<i64: 2>, scalar_prefetch = 0 : i64, scratch_operands = 0 : i64, tpu.core_type = #tpu.core_type<tc>, window_params = [{transform_indices = @transform_0, window_bounds = array<i64: 1, 8, 8, 128>}, {pipeline_mode = #tpu.pipeline_mode<synchronous>, transform_indices = @transform_1, window_bounds = array<i64: 128, 128>}, {transform_indices = @transform_2, window_bounds = array<i64: 1, 8, 8, 128>}, {transform_indices = @transform_3, window_bounds = array<i64: 1, 2, 128>}]} {
    %c0 = arith.constant 0 : index
    %c0_0 = arith.constant 0 : index
    %c0_1 = arith.constant 0 : index
    %c0_2 = arith.constant 0 : index
    %0 = vector.load %arg1[%c0, %c0_0, %c0_1, %c0_2] : memref<1x8x8x128xf32, #tpu.memory_space<vmem>>, vector<1x8x8x128xf32>
    %1 = vector.shape_cast %0 : vector<1x8x8x128xf32> to vector<64x128xf32>
    %2 = arith.truncf %1 : vector<64x128xf32> to vector<64x128xbf16>
    %c0_3 = arith.constant 0 : index
    %c0_4 = arith.constant 0 : index
    %3 = vector.load %arg2[%c0_3, %c0_4] : memref<128x128xbf16, #tpu.memory_space<vmem>>, vector<128x128xbf16>
    %cst = arith.constant dense<0.000000e+00> : vector<64x128xf32>
    %4 = tpu.matmul %2, %3, %cst {dimension_numbers = #tpu.dot_dimension_numbers<[1], [0], [0], [1], [0, 0, 1, 1], [], []>} : vector<64x128xbf16>, vector<128x128xbf16>, vector<64x128xf32> -> vector<64x128xf32>
    %5 = vector.shape_cast %4 : vector<64x128xf32> to vector<1x8x8x128xf32>
    %c0_5 = arith.constant 0 : index
    %c0_6 = arith.constant 0 : index
    %c0_7 = arith.constant 0 : index
    %c0_8 = arith.constant 0 : index
    %6 = vector.load %arg3[%c0_5, %c0_6, %c0_7, %c0_8] : memref<1x8x8x128xf32, #tpu.memory_space<vmem>>, vector<1x8x8x128xf32>
    tpu.vector_store %arg3[%c0_5, %c0_6, %c0_7, %c0_8], %5 {strides = array<i32>} : memref<1x8x8x128xf32, #tpu.memory_space<vmem>>, vector<1x8x8x128xf32>,
    %cst_9 = arith.constant dense<0.000000e+00> : vector<128xf32>
    %7 = vector.multi_reduction <add>, %4, %cst_9 [0] : vector<64x128xf32> to vector<128xf32>
    %8 = vector.shape_cast %7 : vector<128xf32> to vector<1x128xf32>
    %cst_10 = arith.constant 6.400000e+01 : f32
    %9 = vector.broadcast %cst_10 : f32 to vector<1x128xf32>
    %10 = arith.divf %8, %9 : vector<1x128xf32>
    %11 = vector.broadcast %10 : vector<1x128xf32> to vector<64x128xf32>
    %12 = arith.subf %4, %11 : vector<64x128xf32>
    %13 = arith.mulf %12, %12 : vector<64x128xf32>
    %cst_11 = arith.constant dense<0.000000e+00> : vector<128xf32>
    %14 = vector.multi_reduction <add>, %13, %cst_11 [0] : vector<64x128xf32> to vector<128xf32>
    %15 = vector.shape_cast %14 : vector<128xf32> to vector<1x128xf32>
    %16 = vector.shape_cast %10 : vector<1x128xf32> to vector<1x1x128xf32>
    %c0_12 = arith.constant 0 : index
    %c0_13 = arith.constant 0 : index
    %c0_14 = arith.constant 0 : index
    %17 = vector.load %arg4[%c0_12, %c0_13, %c0_14] : memref<1x2x128xf32, #tpu.memory_space<vmem>>, vector<1x1x128xf32>
    tpu.vector_store %arg4[%c0_12, %c0_13, %c0_14], %16 {strides = array<i32>} : memref<1x2x128xf32, #tpu.memory_space<vmem>>, vector<1x1x128xf32>,
    %18 = vector.shape_cast %15 : vector<1x128xf32> to vector<1x1x128xf32>
    %c0_15 = arith.constant 0 : index
    %c1 = arith.constant 1 : index
    %c0_16 = arith.constant 0 : index
    %19 = vector.load %arg4[%c0_15, %c1, %c0_16] : memref<1x2x128xf32, #tpu.memory_space<vmem>>, vector<1x1x128xf32>
    tpu.vector_store %arg4[%c0_15, %c1, %c0_16], %18 {strides = array<i32>} : memref<1x2x128xf32, #tpu.memory_space<vmem>>, vector<1x1x128xf32>,
    return
  }
  func.func @transform_0(%arg0: i32) -> (i32, i32, i32, i32) {
    %c0_i32 = arith.constant 0 : i32
    %c0_i32_0 = arith.constant 0 : i32
    %c0_i32_1 = arith.constant 0 : i32
    %c0_i32_2 = arith.constant 0 : i32
    return %arg0, %c0_i32, %c0_i32_0, %c0_i32_1 : i32, i32, i32, i32
  }
  func.func @transform_1(%arg0: i32) -> (i32, i32) {
    %c0_i32 = arith.constant 0 : i32
    %c0_i32_0 = arith.constant 0 : i32
    %c0_i32_1 = arith.constant 0 : i32
    return %c0_i32, %c0_i32_0 : i32, i32
  }
  func.func @transform_2(%arg0: i32) -> (i32, i32, i32, i32) {
    %c0_i32 = arith.constant 0 : i32
    %c0_i32_0 = arith.constant 0 : i32
    %c0_i32_1 = arith.constant 0 : i32
    %c0_i32_2 = arith.constant 0 : i32
    return %arg0, %c0_i32, %c0_i32_0, %c0_i32_1 : i32, i32, i32, i32
  }
  func.func @transform_3(%arg0: i32) -> (i32, i32, i32) {
    %c0_i32 = arith.constant 0 : i32
    %c0_i32_0 = arith.constant 0 : i32
    %c0_i32_1 = arith.constant 0 : i32
    return %arg0, %c0_i32, %c0_i32_0 : i32, i32, i32
  }
}

module attributes {stable_mosaic.version = 11 : i64} {
  func.func @conv2_kernel(%arg0: i32, %arg1: memref<1x8x8x128xf32, #tpu.memory_space<vmem>>, %arg2: memref<1x128xf32, #tpu.memory_space<vmem>>, %arg3: memref<1x128xf32, #tpu.memory_space<vmem>>, %arg4: memref<1152x128xbf16, #tpu.memory_space<vmem>>, %arg5: memref<1x8x8x128xf32, #tpu.memory_space<vmem>>, %arg6: memref<1x2x128xf32, #tpu.memory_space<vmem>>) attributes {dimension_semantics = [#tpu.dimension_semantics<parallel>], iteration_bounds = array<i64: 2>, scalar_prefetch = 0 : i64, scratch_operands = 0 : i64, tpu.core_type = #tpu.core_type<tc>, window_params = [{transform_indices = @transform_0, window_bounds = array<i64: 1, 8, 8, 128>}, {pipeline_mode = #tpu.pipeline_mode<synchronous>, transform_indices = @transform_1, window_bounds = array<i64: 1, 128>}, {pipeline_mode = #tpu.pipeline_mode<synchronous>, transform_indices = @transform_2, window_bounds = array<i64: 1, 128>}, {pipeline_mode = #tpu.pipeline_mode<synchronous>, transform_indices = @transform_3, window_bounds = array<i64: 1152, 128>}, {transform_indices = @transform_4, window_bounds = array<i64: 1, 8, 8, 128>}, {transform_indices = @transform_5, window_bounds = array<i64: 1, 2, 128>}]} {
    %c0 = arith.constant 0 : index
    %c0_0 = arith.constant 0 : index
    %c0_1 = arith.constant 0 : index
    %c0_2 = arith.constant 0 : index
    %0 = vector.load %arg1[%c0, %c0_0, %c0_1, %c0_2] : memref<1x8x8x128xf32, #tpu.memory_space<vmem>>, vector<1x8x8x128xf32>
    %1 = vector.shape_cast %0 : vector<1x8x8x128xf32> to vector<64x128xf32>
    %c0_3 = arith.constant 0 : index
    %c0_4 = arith.constant 0 : index
    %2 = vector.load %arg2[%c0_3, %c0_4] : memref<1x128xf32, #tpu.memory_space<vmem>>, vector<1x128xf32>
    %3 = vector.broadcast %2 : vector<1x128xf32> to vector<64x128xf32>
    %4 = arith.mulf %1, %3 : vector<64x128xf32>
    %c0_5 = arith.constant 0 : index
    %c0_6 = arith.constant 0 : index
    %5 = vector.load %arg3[%c0_5, %c0_6] : memref<1x128xf32, #tpu.memory_space<vmem>>, vector<1x128xf32>
    %6 = vector.broadcast %5 : vector<1x128xf32> to vector<64x128xf32>
    %7 = arith.addf %4, %6 : vector<64x128xf32>
    %cst = arith.constant 0.000000e+00 : f32
    %8 = vector.broadcast %cst : f32 to vector<64x128xf32>
    %9 = arith.maximumf %7, %8 : vector<64x128xf32>
    %cst_7 = arith.constant 0.000000e+00 : f32
    %10 = vector.broadcast %cst_7 : f32 to vector<16x128xf32>
    %11 = tpu.concatenate %10, %9, %10 in 0 : vector<16x128xf32>, vector<64x128xf32>, vector<16x128xf32> -> vector<96x128xf32>
    %12 = tpu.iota {dimensions = array<i32: 0>} : vector<80x128xi32>
    %c8_i32 = arith.constant 8 : i32
    %c0_i32 = arith.constant 0 : i32
    %13 = arith.cmpi eq, %c8_i32, %c0_i32 : i32
    %c1_i32 = arith.constant 1 : i32
    %14 = arith.select %13, %c1_i32, %c8_i32 : i32
    %15 = vector.broadcast %14 : i32 to vector<80x128xi32>
    %16 = arith.remsi %12, %15 : vector<80x128xi32>
    %c0_i32_8 = arith.constant 0 : i32
    %17 = vector.broadcast %c0_i32_8 : i32 to vector<80x128xi32>
    %18 = arith.cmpi ne, %16, %17 : vector<80x128xi32>
    %c0_i32_9 = arith.constant 0 : i32
    %19 = vector.broadcast %c0_i32_9 : i32 to vector<80x128xi32>
    %20 = arith.cmpi slt, %16, %19 : vector<80x128xi32>
    %c0_i32_10 = arith.constant 0 : i32
    %21 = arith.cmpi slt, %14, %c0_i32_10 : i32
    %22 = vector.broadcast %21 : i1 to vector<80x128xi1>
    %23 = vector.broadcast %22 : vector<80x128xi1> to vector<80x128xi1>
    %24 = arith.xori %20, %23 : vector<80x128xi1>
    %25 = arith.andi %24, %18 : vector<80x128xi1>
    %26 = vector.broadcast %14 : i32 to vector<80x128xi32>
    %27 = arith.addi %16, %26 : vector<80x128xi32>
    %28 = arith.select %25, %27, %16 : vector<80x128xi1>, vector<80x128xi32>
    %29 = vector.extract_strided_slice %11 {offsets = [7, 0], sizes = [80, 128], strides = [1, 1]} : vector<96x128xf32> to vector<80x128xf32>
    %c0_i32_11 = arith.constant 0 : i32
    %30 = vector.broadcast %c0_i32_11 : i32 to vector<80x128xi32>
    %31 = arith.cmpi sgt, %28, %30 : vector<80x128xi32>
    %cst_12 = arith.constant 0.000000e+00 : f32
    %32 = vector.broadcast %cst_12 : f32 to vector<80x128xf32>
    %33 = arith.select %31, %29, %32 : vector<80x128xi1>, vector<80x128xf32>
    %34 = arith.truncf %33 : vector<80x128xf32> to vector<80x128xbf16>
    %35 = vector.extract_strided_slice %11 {offsets = [8, 0], sizes = [80, 128], strides = [1, 1]} : vector<96x128xf32> to vector<80x128xf32>
    %36 = arith.truncf %35 : vector<80x128xf32> to vector<80x128xbf16>
    %37 = vector.extract_strided_slice %11 {offsets = [9, 0], sizes = [80, 128], strides = [1, 1]} : vector<96x128xf32> to vector<80x128xf32>
    %c7_i32 = arith.constant 7 : i32
    %38 = vector.broadcast %c7_i32 : i32 to vector<80x128xi32>
    %39 = arith.cmpi slt, %28, %38 : vector<80x128xi32>
    %cst_13 = arith.constant 0.000000e+00 : f32
    %40 = vector.broadcast %cst_13 : f32 to vector<80x128xf32>
    %41 = arith.select %39, %37, %40 : vector<80x128xi1>, vector<80x128xf32>
    %42 = arith.truncf %41 : vector<80x128xf32> to vector<80x128xbf16>
    %43 = vector.extract_strided_slice %34 {offsets = [0, 0], sizes = [64, 128], strides = [1, 1]} : vector<80x128xbf16> to vector<64x128xbf16>
    %44 = vector.extract_strided_slice %36 {offsets = [0, 0], sizes = [64, 128], strides = [1, 1]} : vector<80x128xbf16> to vector<64x128xbf16>
    %45 = vector.extract_strided_slice %42 {offsets = [0, 0], sizes = [64, 128], strides = [1, 1]} : vector<80x128xbf16> to vector<64x128xbf16>
    %46 = vector.extract_strided_slice %34 {offsets = [8, 0], sizes = [64, 128], strides = [1, 1]} : vector<80x128xbf16> to vector<64x128xbf16>
    %47 = vector.extract_strided_slice %36 {offsets = [8, 0], sizes = [64, 128], strides = [1, 1]} : vector<80x128xbf16> to vector<64x128xbf16>
    %48 = vector.extract_strided_slice %42 {offsets = [8, 0], sizes = [64, 128], strides = [1, 1]} : vector<80x128xbf16> to vector<64x128xbf16>
    %49 = vector.extract_strided_slice %34 {offsets = [16, 0], sizes = [64, 128], strides = [1, 1]} : vector<80x128xbf16> to vector<64x128xbf16>
    %50 = vector.extract_strided_slice %36 {offsets = [16, 0], sizes = [64, 128], strides = [1, 1]} : vector<80x128xbf16> to vector<64x128xbf16>
    %51 = vector.extract_strided_slice %42 {offsets = [16, 0], sizes = [64, 128], strides = [1, 1]} : vector<80x128xbf16> to vector<64x128xbf16>
    %52 = tpu.concatenate %43, %44, %45, %46, %47, %48, %49, %50, %51 in 1 : vector<64x128xbf16>, vector<64x128xbf16>, vector<64x128xbf16>, vector<64x128xbf16>, vector<64x128xbf16>, vector<64x128xbf16>, vector<64x128xbf16>, vector<64x128xbf16>, vector<64x128xbf16> -> vector<64x1152xbf16>
    %c0_14 = arith.constant 0 : index
    %c0_15 = arith.constant 0 : index
    %53 = vector.load %arg4[%c0_14, %c0_15] : memref<1152x128xbf16, #tpu.memory_space<vmem>>, vector<1152x128xbf16>
    %cst_16 = arith.constant dense<0.000000e+00> : vector<64x128xf32>
    %54 = tpu.matmul %52, %53, %cst_16 {dimension_numbers = #tpu.dot_dimension_numbers<[1], [0], [0], [1], [0, 0, 1, 1], [], []>} : vector<64x1152xbf16>, vector<1152x128xbf16>, vector<64x128xf32> -> vector<64x128xf32>
    %55 = vector.shape_cast %54 : vector<64x128xf32> to vector<1x8x8x128xf32>
    %c0_17 = arith.constant 0 : index
    %c0_18 = arith.constant 0 : index
    %c0_19 = arith.constant 0 : index
    %c0_20 = arith.constant 0 : index
    %56 = vector.load %arg5[%c0_17, %c0_18, %c0_19, %c0_20] : memref<1x8x8x128xf32, #tpu.memory_space<vmem>>, vector<1x8x8x128xf32>
    tpu.vector_store %arg5[%c0_17, %c0_18, %c0_19, %c0_20], %55 {strides = array<i32>} : memref<1x8x8x128xf32, #tpu.memory_space<vmem>>, vector<1x8x8x128xf32>,
    %cst_21 = arith.constant dense<0.000000e+00> : vector<128xf32>
    %57 = vector.multi_reduction <add>, %54, %cst_21 [0] : vector<64x128xf32> to vector<128xf32>
    %58 = vector.shape_cast %57 : vector<128xf32> to vector<1x128xf32>
    %cst_22 = arith.constant 6.400000e+01 : f32
    %59 = vector.broadcast %cst_22 : f32 to vector<1x128xf32>
    %60 = arith.divf %58, %59 : vector<1x128xf32>
    %61 = vector.broadcast %60 : vector<1x128xf32> to vector<64x128xf32>
    %62 = arith.subf %54, %61 : vector<64x128xf32>
    %63 = arith.mulf %62, %62 : vector<64x128xf32>
    %cst_23 = arith.constant dense<0.000000e+00> : vector<128xf32>
    %64 = vector.multi_reduction <add>, %63, %cst_23 [0] : vector<64x128xf32> to vector<128xf32>
    %65 = vector.shape_cast %64 : vector<128xf32> to vector<1x128xf32>
    %66 = vector.shape_cast %60 : vector<1x128xf32> to vector<1x1x128xf32>
    %c0_24 = arith.constant 0 : index
    %c0_25 = arith.constant 0 : index
    %c0_26 = arith.constant 0 : index
    %67 = vector.load %arg6[%c0_24, %c0_25, %c0_26] : memref<1x2x128xf32, #tpu.memory_space<vmem>>, vector<1x1x128xf32>
    tpu.vector_store %arg6[%c0_24, %c0_25, %c0_26], %66 {strides = array<i32>} : memref<1x2x128xf32, #tpu.memory_space<vmem>>, vector<1x1x128xf32>,
    %68 = vector.shape_cast %65 : vector<1x128xf32> to vector<1x1x128xf32>
    %c0_27 = arith.constant 0 : index
    %c1 = arith.constant 1 : index
    %c0_28 = arith.constant 0 : index
    %69 = vector.load %arg6[%c0_27, %c1, %c0_28] : memref<1x2x128xf32, #tpu.memory_space<vmem>>, vector<1x1x128xf32>
    tpu.vector_store %arg6[%c0_27, %c1, %c0_28], %68 {strides = array<i32>} : memref<1x2x128xf32, #tpu.memory_space<vmem>>, vector<1x1x128xf32>,
    return
  }
  func.func @transform_0(%arg0: i32) -> (i32, i32, i32, i32) {
    %c0_i32 = arith.constant 0 : i32
    %c0_i32_0 = arith.constant 0 : i32
    %c0_i32_1 = arith.constant 0 : i32
    %c0_i32_2 = arith.constant 0 : i32
    return %arg0, %c0_i32, %c0_i32_0, %c0_i32_1 : i32, i32, i32, i32
  }
  func.func @transform_1(%arg0: i32) -> (i32, i32) {
    %c0_i32 = arith.constant 0 : i32
    %c0_i32_0 = arith.constant 0 : i32
    %c0_i32_1 = arith.constant 0 : i32
    return %c0_i32, %c0_i32_0 : i32, i32
  }
  func.func @transform_2(%arg0: i32) -> (i32, i32) {
    %c0_i32 = arith.constant 0 : i32
    %c0_i32_0 = arith.constant 0 : i32
    %c0_i32_1 = arith.constant 0 : i32
    return %c0_i32, %c0_i32_0 : i32, i32
  }
  func.func @transform_3(%arg0: i32) -> (i32, i32) {
    %c0_i32 = arith.constant 0 : i32
    %c0_i32_0 = arith.constant 0 : i32
    %c0_i32_1 = arith.constant 0 : i32
    return %c0_i32, %c0_i32_0 : i32, i32
  }
  func.func @transform_4(%arg0: i32) -> (i32, i32, i32, i32) {
    %c0_i32 = arith.constant 0 : i32
    %c0_i32_0 = arith.constant 0 : i32
    %c0_i32_1 = arith.constant 0 : i32
    %c0_i32_2 = arith.constant 0 : i32
    return %arg0, %c0_i32, %c0_i32_0, %c0_i32_1 : i32, i32, i32, i32
  }
  func.func @transform_5(%arg0: i32) -> (i32, i32, i32) {
    %c0_i32 = arith.constant 0 : i32
    %c0_i32_0 = arith.constant 0 : i32
    %c0_i32_1 = arith.constant 0 : i32
    return %arg0, %c0_i32, %c0_i32_0 : i32, i32, i32
  }
}

module attributes {stable_mosaic.version = 11 : i64} {
  func.func @conv3_kernel(%arg0: i32, %arg1: memref<1x8x8x128xf32, #tpu.memory_space<vmem>>, %arg2: memref<1x128xf32, #tpu.memory_space<vmem>>, %arg3: memref<1x128xf32, #tpu.memory_space<vmem>>, %arg4: memref<128x128xbf16, #tpu.memory_space<vmem>>, %arg5: memref<1x8x8x128xf32, #tpu.memory_space<vmem>>, %arg6: memref<1x2x128xf32, #tpu.memory_space<vmem>>) attributes {dimension_semantics = [#tpu.dimension_semantics<parallel>], iteration_bounds = array<i64: 2>, scalar_prefetch = 0 : i64, scratch_operands = 0 : i64, tpu.core_type = #tpu.core_type<tc>, window_params = [{transform_indices = @transform_0, window_bounds = array<i64: 1, 8, 8, 128>}, {pipeline_mode = #tpu.pipeline_mode<synchronous>, transform_indices = @transform_1, window_bounds = array<i64: 1, 128>}, {pipeline_mode = #tpu.pipeline_mode<synchronous>, transform_indices = @transform_2, window_bounds = array<i64: 1, 128>}, {pipeline_mode = #tpu.pipeline_mode<synchronous>, transform_indices = @transform_3, window_bounds = array<i64: 128, 128>}, {transform_indices = @transform_4, window_bounds = array<i64: 1, 8, 8, 128>}, {transform_indices = @transform_5, window_bounds = array<i64: 1, 2, 128>}]} {
    %c0 = arith.constant 0 : index
    %c0_0 = arith.constant 0 : index
    %c0_1 = arith.constant 0 : index
    %c0_2 = arith.constant 0 : index
    %0 = vector.load %arg1[%c0, %c0_0, %c0_1, %c0_2] : memref<1x8x8x128xf32, #tpu.memory_space<vmem>>, vector<1x8x8x128xf32>
    %1 = vector.shape_cast %0 : vector<1x8x8x128xf32> to vector<64x128xf32>
    %c0_3 = arith.constant 0 : index
    %c0_4 = arith.constant 0 : index
    %2 = vector.load %arg2[%c0_3, %c0_4] : memref<1x128xf32, #tpu.memory_space<vmem>>, vector<1x128xf32>
    %3 = vector.broadcast %2 : vector<1x128xf32> to vector<64x128xf32>
    %4 = arith.mulf %1, %3 : vector<64x128xf32>
    %c0_5 = arith.constant 0 : index
    %c0_6 = arith.constant 0 : index
    %5 = vector.load %arg3[%c0_5, %c0_6] : memref<1x128xf32, #tpu.memory_space<vmem>>, vector<1x128xf32>
    %6 = vector.broadcast %5 : vector<1x128xf32> to vector<64x128xf32>
    %7 = arith.addf %4, %6 : vector<64x128xf32>
    %cst = arith.constant 0.000000e+00 : f32
    %8 = vector.broadcast %cst : f32 to vector<64x128xf32>
    %9 = arith.maximumf %7, %8 : vector<64x128xf32>
    %10 = arith.truncf %9 : vector<64x128xf32> to vector<64x128xbf16>
    %c0_7 = arith.constant 0 : index
    %c0_8 = arith.constant 0 : index
    %11 = vector.load %arg4[%c0_7, %c0_8] : memref<128x128xbf16, #tpu.memory_space<vmem>>, vector<128x128xbf16>
    %cst_9 = arith.constant dense<0.000000e+00> : vector<64x128xf32>
    %12 = tpu.matmul %10, %11, %cst_9 {dimension_numbers = #tpu.dot_dimension_numbers<[1], [0], [0], [1], [0, 0, 1, 1], [], []>} : vector<64x128xbf16>, vector<128x128xbf16>, vector<64x128xf32> -> vector<64x128xf32>
    %13 = vector.shape_cast %12 : vector<64x128xf32> to vector<1x8x8x128xf32>
    %c0_10 = arith.constant 0 : index
    %c0_11 = arith.constant 0 : index
    %c0_12 = arith.constant 0 : index
    %c0_13 = arith.constant 0 : index
    %14 = vector.load %arg5[%c0_10, %c0_11, %c0_12, %c0_13] : memref<1x8x8x128xf32, #tpu.memory_space<vmem>>, vector<1x8x8x128xf32>
    tpu.vector_store %arg5[%c0_10, %c0_11, %c0_12, %c0_13], %13 {strides = array<i32>} : memref<1x8x8x128xf32, #tpu.memory_space<vmem>>, vector<1x8x8x128xf32>,
    %cst_14 = arith.constant dense<0.000000e+00> : vector<128xf32>
    %15 = vector.multi_reduction <add>, %12, %cst_14 [0] : vector<64x128xf32> to vector<128xf32>
    %16 = vector.shape_cast %15 : vector<128xf32> to vector<1x128xf32>
    %cst_15 = arith.constant 6.400000e+01 : f32
    %17 = vector.broadcast %cst_15 : f32 to vector<1x128xf32>
    %18 = arith.divf %16, %17 : vector<1x128xf32>
    %19 = vector.broadcast %18 : vector<1x128xf32> to vector<64x128xf32>
    %20 = arith.subf %12, %19 : vector<64x128xf32>
    %21 = arith.mulf %20, %20 : vector<64x128xf32>
    %cst_16 = arith.constant dense<0.000000e+00> : vector<128xf32>
    %22 = vector.multi_reduction <add>, %21, %cst_16 [0] : vector<64x128xf32> to vector<128xf32>
    %23 = vector.shape_cast %22 : vector<128xf32> to vector<1x128xf32>
    %24 = vector.shape_cast %18 : vector<1x128xf32> to vector<1x1x128xf32>
    %c0_17 = arith.constant 0 : index
    %c0_18 = arith.constant 0 : index
    %c0_19 = arith.constant 0 : index
    %25 = vector.load %arg6[%c0_17, %c0_18, %c0_19] : memref<1x2x128xf32, #tpu.memory_space<vmem>>, vector<1x1x128xf32>
    tpu.vector_store %arg6[%c0_17, %c0_18, %c0_19], %24 {strides = array<i32>} : memref<1x2x128xf32, #tpu.memory_space<vmem>>, vector<1x1x128xf32>,
    %26 = vector.shape_cast %23 : vector<1x128xf32> to vector<1x1x128xf32>
    %c0_20 = arith.constant 0 : index
    %c1 = arith.constant 1 : index
    %c0_21 = arith.constant 0 : index
    %27 = vector.load %arg6[%c0_20, %c1, %c0_21] : memref<1x2x128xf32, #tpu.memory_space<vmem>>, vector<1x1x128xf32>
    tpu.vector_store %arg6[%c0_20, %c1, %c0_21], %26 {strides = array<i32>} : memref<1x2x128xf32, #tpu.memory_space<vmem>>, vector<1x1x128xf32>,
    return
  }
  func.func @transform_0(%arg0: i32) -> (i32, i32, i32, i32) {
    %c0_i32 = arith.constant 0 : i32
    %c0_i32_0 = arith.constant 0 : i32
    %c0_i32_1 = arith.constant 0 : i32
    %c0_i32_2 = arith.constant 0 : i32
    return %arg0, %c0_i32, %c0_i32_0, %c0_i32_1 : i32, i32, i32, i32
  }
  func.func @transform_1(%arg0: i32) -> (i32, i32) {
    %c0_i32 = arith.constant 0 : i32
    %c0_i32_0 = arith.constant 0 : i32
    %c0_i32_1 = arith.constant 0 : i32
    return %c0_i32, %c0_i32_0 : i32, i32
  }
  func.func @transform_2(%arg0: i32) -> (i32, i32) {
    %c0_i32 = arith.constant 0 : i32
    %c0_i32_0 = arith.constant 0 : i32
    %c0_i32_1 = arith.constant 0 : i32
    return %c0_i32, %c0_i32_0 : i32, i32
  }
  func.func @transform_3(%arg0: i32) -> (i32, i32) {
    %c0_i32 = arith.constant 0 : i32
    %c0_i32_0 = arith.constant 0 : i32
    %c0_i32_1 = arith.constant 0 : i32
    return %c0_i32, %c0_i32_0 : i32, i32
  }
  func.func @transform_4(%arg0: i32) -> (i32, i32, i32, i32) {
    %c0_i32 = arith.constant 0 : i32
    %c0_i32_0 = arith.constant 0 : i32
    %c0_i32_1 = arith.constant 0 : i32
    %c0_i32_2 = arith.constant 0 : i32
    return %arg0, %c0_i32, %c0_i32_0, %c0_i32_1 : i32, i32, i32, i32
  }
  func.func @transform_5(%arg0: i32) -> (i32, i32, i32) {
    %c0_i32 = arith.constant 0 : i32
    %c0_i32_0 = arith.constant 0 : i32
    %c0_i32_1 = arith.constant 0 : i32
    return %arg0, %c0_i32, %c0_i32_0 : i32, i32, i32
  }
}

module attributes {stable_mosaic.version = 11 : i64} {
  func.func @bn_add_relu_kernel(%arg0: i32, %arg1: memref<1x8x8x128xf32, #tpu.memory_space<vmem>>, %arg2: memref<1x128xf32, #tpu.memory_space<vmem>>, %arg3: memref<1x128xf32, #tpu.memory_space<vmem>>, %arg4: memref<1x8x8x128xf32, #tpu.memory_space<vmem>>, %arg5: memref<1x8x8x128xf32, #tpu.memory_space<vmem>>) attributes {dimension_semantics = [#tpu.dimension_semantics<parallel>], iteration_bounds = array<i64: 2>, scalar_prefetch = 0 : i64, scratch_operands = 0 : i64, tpu.core_type = #tpu.core_type<tc>, window_params = [{transform_indices = @transform_0, window_bounds = array<i64: 1, 8, 8, 128>}, {pipeline_mode = #tpu.pipeline_mode<synchronous>, transform_indices = @transform_1, window_bounds = array<i64: 1, 128>}, {pipeline_mode = #tpu.pipeline_mode<synchronous>, transform_indices = @transform_2, window_bounds = array<i64: 1, 128>}, {transform_indices = @transform_3, window_bounds = array<i64: 1, 8, 8, 128>}, {transform_indices = @transform_4, window_bounds = array<i64: 1, 8, 8, 128>}]} {
    %c0 = arith.constant 0 : index
    %c0_0 = arith.constant 0 : index
    %c0_1 = arith.constant 0 : index
    %c0_2 = arith.constant 0 : index
    %0 = vector.load %arg1[%c0, %c0_0, %c0_1, %c0_2] : memref<1x8x8x128xf32, #tpu.memory_space<vmem>>, vector<1x8x8x128xf32>
    %c0_3 = arith.constant 0 : index
    %c0_4 = arith.constant 0 : index
    %1 = vector.load %arg2[%c0_3, %c0_4] : memref<1x128xf32, #tpu.memory_space<vmem>>, vector<1x128xf32>
    %2 = vector.shape_cast %1 : vector<1x128xf32> to vector<1x1x1x128xf32>
    %3 = vector.broadcast %2 : vector<1x1x1x128xf32> to vector<1x8x8x128xf32>
    %4 = arith.mulf %0, %3 : vector<1x8x8x128xf32>
    %c0_5 = arith.constant 0 : index
    %c0_6 = arith.constant 0 : index
    %5 = vector.load %arg3[%c0_5, %c0_6] : memref<1x128xf32, #tpu.memory_space<vmem>>, vector<1x128xf32>
    %6 = vector.shape_cast %5 : vector<1x128xf32> to vector<1x1x1x128xf32>
    %7 = vector.broadcast %6 : vector<1x1x1x128xf32> to vector<1x8x8x128xf32>
    %8 = arith.addf %4, %7 : vector<1x8x8x128xf32>
    %c0_7 = arith.constant 0 : index
    %c0_8 = arith.constant 0 : index
    %c0_9 = arith.constant 0 : index
    %c0_10 = arith.constant 0 : index
    %9 = vector.load %arg4[%c0_7, %c0_8, %c0_9, %c0_10] : memref<1x8x8x128xf32, #tpu.memory_space<vmem>>, vector<1x8x8x128xf32>
    %10 = arith.addf %8, %9 : vector<1x8x8x128xf32>
    %cst = arith.constant 0.000000e+00 : f32
    %11 = vector.broadcast %cst : f32 to vector<1x8x8x128xf32>
    %12 = arith.maximumf %10, %11 : vector<1x8x8x128xf32>
    %c0_11 = arith.constant 0 : index
    %c0_12 = arith.constant 0 : index
    %c0_13 = arith.constant 0 : index
    %c0_14 = arith.constant 0 : index
    %13 = vector.load %arg5[%c0_11, %c0_12, %c0_13, %c0_14] : memref<1x8x8x128xf32, #tpu.memory_space<vmem>>, vector<1x8x8x128xf32>
    tpu.vector_store %arg5[%c0_11, %c0_12, %c0_13, %c0_14], %12 {strides = array<i32>} : memref<1x8x8x128xf32, #tpu.memory_space<vmem>>, vector<1x8x8x128xf32>,
    return
  }
  func.func @transform_0(%arg0: i32) -> (i32, i32, i32, i32) {
    %c0_i32 = arith.constant 0 : i32
    %c0_i32_0 = arith.constant 0 : i32
    %c0_i32_1 = arith.constant 0 : i32
    %c0_i32_2 = arith.constant 0 : i32
    return %arg0, %c0_i32, %c0_i32_0, %c0_i32_1 : i32, i32, i32, i32
  }
  func.func @transform_1(%arg0: i32) -> (i32, i32) {
    %c0_i32 = arith.constant 0 : i32
    %c0_i32_0 = arith.constant 0 : i32
    %c0_i32_1 = arith.constant 0 : i32
    return %c0_i32, %c0_i32_0 : i32, i32
  }
  func.func @transform_2(%arg0: i32) -> (i32, i32) {
    %c0_i32 = arith.constant 0 : i32
    %c0_i32_0 = arith.constant 0 : i32
    %c0_i32_1 = arith.constant 0 : i32
    return %c0_i32, %c0_i32_0 : i32, i32
  }
  func.func @transform_3(%arg0: i32) -> (i32, i32, i32, i32) {
    %c0_i32 = arith.constant 0 : i32
    %c0_i32_0 = arith.constant 0 : i32
    %c0_i32_1 = arith.constant 0 : i32
    %c0_i32_2 = arith.constant 0 : i32
    return %arg0, %c0_i32, %c0_i32_0, %c0_i32_1 : i32, i32, i32, i32
  }
  func.func @transform_4(%arg0: i32) -> (i32, i32, i32, i32) {
    %c0_i32 = arith.constant 0 : i32
    %c0_i32_0 = arith.constant 0 : i32
    %c0_i32_1 = arith.constant 0 : i32
    %c0_i32_2 = arith.constant 0 : i32
    return %arg0, %c0_i32, %c0_i32_0, %c0_i32_1 : i32, i32, i32, i32
  }
}

</mosaic_0001>

<bundles_post_ra>
// kernel: bottleneck_pallas.4
= control target key start
LH: loop header
LB: loop body
LE: loop exit
PB: predicated region body
PF: predicated region fallthrough
CT: control target
= control target key end

     0   :  { %s582_s12 = smov 0   ;;  %s648_s0 = inlined_call_operand.vmem [shape: f32[2,8,8,128], index: 0, kind: input, shape index: {}]   ;;  %s649_s1 = inlined_call_operand.vmem [shape: bf16[128,128], index: 1, kind: input, shape index: {}]   ;;  %s650_s2 = inlined_call_operand.vmem [shape: f32[2,8,8,128], index: 2, kind: output, shape index: {0}]   ;;  %s651_s3 = inlined_call_operand.vmem [shape: f32[2,2,128], index: 3, kind: output, shape index: {1}]  }
   0x1 LB: > { %s464_s13 = sadd.s32 4294967295, %s560_s12   ;;  %p468_p0 = scmp.ge.s32.totalorder %s560_s12, 1  ;;  %s560_s12 = sphi %s582_s12, %s14_s12  }
   0x2   : > { %p140_p1 = scmp.lt.s32.totalorder %s560_s12, 3 }
   0x4   : > { %p141_p2 = pnand %p468_p0, %p140_p1 }
   0x5   : > { %v546_v0 = vld [vmem:[%s649_s1] sm:$0xff] (!%p141_p2)   ;;  %p168_p3 = scmp.lt.s32.totalorder (!%p141_p2), %s464_s13, 1  ;;  %v547_v1 = vld [vmem:[%s649_s1 + $0x8] sm:$0xff] (!%p141_p2)   ;;  %v548_v2 = vld [vmem:[%s649_s1 + $0x10] sm:$0xff] (!%p141_p2)  }
   0x6   : > { %144 = sbr.rel (%p141_p2) target bundleno = 312 (0x138), region = 28  ;;  %498 = vmatprep.subr.bf16.mxu0 (!%p141_p2), %v546_v0  ;;  %522 = vmatprep.subr.bf16.mxu1 (!%p141_p2), %v546_v0  ;;  %v549_v3 = vld [vmem:[%s649_s1 + $0x18] sm:$0xff] (!%p141_p2)   ;;  %v550_v10 = vld [vmem:[%s649_s1 + $0x20] sm:$0xff] (!%p141_p2)   ;;  %v551_v11 = vld [vmem:[%s649_s1 + $0x28] sm:$0xff] (!%p141_p2)  }
   0x7   : > { %499 = vmatpush3.bf16.msra.mxu0 (!%p141_p2), %v546_v0  ;;  %530 = vmatpush3.bf16.msra.mxu1 (!%p141_p2), %v546_v0  ;;  %v552_v12 = vld [vmem:[%s649_s1 + $0x30] sm:$0xff] (!%p141_p2)   ;;  %v553_v13 = vld [vmem:[%s649_s1 + $0x38] sm:$0xff] (!%p141_p2)  }
   0x8   : > { %500 = vmatprep.subr.bf16.mxu0 (!%p141_p2), %v547_v1  ;;  %523 = vmatprep.subr.bf16.mxu1 (!%p141_p2), %v547_v1 }
   0xb   : > { %501 = vmatpush3.bf16.msra.mxu0 (!%p141_p2), %v547_v1  ;;  %531 = vmatpush3.bf16.msra.mxu1 (!%p141_p2), %v547_v1 }
   0xc   : > { %502 = vmatprep.subr.bf16.mxu0 (!%p141_p2), %v548_v2  ;;  %524 = vmatprep.subr.bf16.mxu1 (!%p141_p2), %v548_v2 }
   0xd   : > { %s653_s13 = smov (!%p168_p3, %s464_s13), 1 }
   0xe   : > { %s484_s20 = sshll.u32 %s653_s13, 6  ;;  %s473_s10 = sshll.u32 %s653_s13, 1 }
   0xf   : > { %s607_s23 = scalar_lea.vmem %s648_s0, %s484_s20  ;;  %503 = vmatpush3.bf16.msra.mxu0 %v548_v2  ;;  %532 = vmatpush3.bf16.msra.mxu1 %v548_v2  ;;  %s177_s9 = scalar_lea.vmem %s650_s2, %s484_s20 }
  0x10   : > { %v183_v4 = vld [vmem:[%s607_s23] sm:$0xff]  ;;  %v184_v5 = vld [vmem:[%s607_s23 + $0x8] sm:$0xff]  ;;  %504 = vmatprep.subr.bf16.mxu0 %v549_v3  ;;  %525 = vmatprep.subr.bf16.mxu1 %v549_v3  ;;  %v185_v14 = vld [vmem:[%s607_s23 + $0x10] sm:$0xff]  ;;  %s641_s15 = scalar_lea.vmem %s651_s3, %s473_s10 }
  0x11   : > { %v191_v6 = vpack.c.bf16 %v184_v5, %v183_v4  ;;  %v187_v7 = vld [vmem:[%s607_s23 + $0x20] sm:$0xff]  ;;  %v188_v8 = vld [vmem:[%s607_s23 + $0x28] sm:$0xff]  ;;  %v186_v15 = vld [vmem:[%s607_s23 + $0x18] sm:$0xff] }
  0x12   : > { %v193_v9 = vpack.c.bf16 %v188_v8, %v187_v7  ;;  %v189_v16 = vld [vmem:[%s607_s23 + $0x30] sm:$0xff]  ;;  %v190_v17 = vld [vmem:[%s607_s23 + $0x38] sm:$0xff]  ;;  %v192_v18 = vpack.c.bf16 %v186_v15, %v185_v14 }
  0x13   : > { %514 = vmatprep.mubr.bf16.mxu0 %v191_v6  ;;  %505 = vmatpush3.bf16.msra.mxu0 %v549_v3  ;;  %v194_v19 = vpack.c.bf16 %v190_v17, %v189_v16 }
  0x14   : > { %518 = vmatprep.mubr.bf16.mxu1 %v193_v9  ;;  %533 = vmatpush3.bf16.msra.mxu1 %v549_v3 }
  0x15   : > { %506 = vmatprep.subr.bf16.mxu0 %v550_v10  ;;  %526 = vmatprep.subr.bf16.mxu1 %v550_v10 }
  0x17   : > { %507 = vmatpush3.bf16.msra.mxu0 %v550_v10 }
  0x18   : > { %534 = vmatpush3.bf16.msra.mxu1 %v550_v10  ;;  %508 = vmatprep.subr.bf16.mxu0 %v551_v11 }
  0x19   : > { %527 = vmatprep.subr.bf16.mxu1 %v551_v11 }
  0x1b   : > { %509 = vmatpush3.bf16.msra.mxu0 %v551_v11 }
  0x1c   : > { %535 = vmatpush3.bf16.msra.mxu1 %v551_v11  ;;  %510 = vmatprep.subr.bf16.mxu0 %v552_v12 }
  0x1d   : > { %528 = vmatprep.subr.bf16.mxu1 %v552_v12 }
  0x1f   : > { %511 = vmatpush3.bf16.msra.mxu0 %v552_v12 }
  0x20   : > { %536 = vmatpush3.bf16.msra.mxu1 %v552_v12  ;;  %512 = vmatprep.subr.bf16.mxu0 %v553_v13 }
  0x21   : > { %529 = vmatprep.subr.bf16.mxu1 %v553_v13 }
  0x23   : > { %513 = vmatpush3.bf16.msra.mxu0 %v553_v13 }
  0x24   : > { %537 = vmatpush3.bf16.msra.mxu1 %v553_v13 }
  0x26   : > { %515 = vmatmul.mubr.bf16.vlgmr.msra.gmra.mrb[0].mxu0 %v192_v18 }
  0x27   : > { %519 = vmatmul.mubr.bf16.vlgmr.msra.gmra.mrb[0].mxu1 %v194_v19 }
  0xf9   : > { %v516_v20 = vpop.f32.mrb[0].mxu0 }
  0xfa   : > { %v520_v21 = vpop.f32.mrb[0].mxu1  ;;  %326 = vst [vmem:[%s177_s9 + $0x10] sm:$0xff] %v516_v20  ;;  %v293_v22 = vpop.f32.mrb[1].mxu0 }
  0xfb   : > { %330 = vst [vmem:[%s177_s9 + $0x30] sm:$0xff] %v520_v21  ;;  %v309_v23 = vpop.f32.mrb[1].mxu1  ;;  %324 = vst [vmem:[%s177_s9] sm:$0xff] %v293_v22  ;;  %v517_v24 = vpop.f32.mrb[2].mxu0 }
  0xfc   : > { %328 = vst [vmem:[%s177_s9 + $0x20] sm:$0xff] %v309_v23  ;;  %v521_v25 = vpop.f32.mrb[2].mxu1  ;;  %327 = vst [vmem:[%s177_s9 + $0x18] sm:$0xff] %v517_v24  ;;  %v296_v26 = vpop.f32.mrb[3].mxu0 }
  0xfd   : > { %331 = vst [vmem:[%s177_s9 + $0x38] sm:$0xff] %v521_v25  ;;  %v312_v27 = vpop.f32.mrb[3].mxu1  ;;  %325 = vst [vmem:[%s177_s9 + $0x8] sm:$0xff] %v296_v26  ;;  %v332_v28 = vadd.f32 %v296_v26, %v293_v22 }
  0xfe   : > { %329 = vst [vmem:[%s177_s9 + $0x28] sm:$0xff] %v312_v27 }
  0xff   : > { %v333_v29 = vadd.f32 %v516_v20, %v332_v28 }
 0x101   : > { %v334_v30 = vadd.f32 %v517_v24, %v333_v29 }
 0x103   : > { %v335_v31 = vadd.f32 %v334_v30, %v309_v23 }
 0x105   : > { %v336_v32 = vadd.f32 %v335_v31, %v312_v27 }
 0x107   : > { %v337_v33 = vadd.f32 %v520_v21, %v336_v32 }
 0x109   : > { %v338_v34 = vadd.f32 %v521_v25, %v337_v33 }
 0x10b   : > { %v339_v35 = vrot.slane %v338_v34, 4 }
 0x10d   : > { %v340_v36 = vadd.f32 %v339_v35, %v338_v34 }
 0x10f   : > { %v341_v37 = vrot.slane %v340_v36, 2 }
 0x111   : > { %v342_v38 = vadd.f32 %v341_v37, %v340_v36 }
 0x113   : > { %v343_v39 = vrot.slane %v342_v38, 1 }
 0x115   : > { %v344_v40 = vadd.f32 %v343_v39, %v342_v38 }
 0x117   : > { %v346_v41 = vmul.f32 0.015625, %v344_v40 }
 0x119   : > { %v347_v42 = vsub.f32 %v293_v22, %v346_v41  ;;  %v348_v43 = vsub.f32 %v296_v26, %v346_v41  ;;  %v349_v44 = vsub.f32 %v516_v20, %v346_v41  ;;  %v350_v45 = vsub.f32 %v517_v24, %v346_v41  ;;  %376 = vst [vmem:[%s641_s15] sm:$0x1] %v346_v41 }
 0x11a   : > { %v351_v46 = vsub.f32 %v309_v23, %v346_v41  ;;  %v352_v47 = vsub.f32 %v312_v27, %v346_v41  ;;  %v353_v48 = vsub.f32 %v520_v21, %v346_v41  ;;  %v354_v49 = vsub.f32 %v521_v25, %v346_v41 }
 0x11b   : > { %v355_v50 = vmul.f32 %v347_v42, %v347_v42  ;;  %v356_v51 = vmul.f32 %v348_v43, %v348_v43  ;;  %v357_v52 = vmul.f32 %v349_v44, %v349_v44  ;;  %v358_v54 = vmul.f32 %v350_v45, %v350_v45 }
 0x11c   : > { %v359_v56 = vmul.f32 %v351_v46, %v351_v46  ;;  %v360_v58 = vmul.f32 %v352_v47, %v352_v47  ;;  %v361_v60 = vmul.f32 %v353_v48, %v353_v48  ;;  %v362_v62 = vmul.f32 %v354_v49, %v354_v49 }
 0x11d   : > { %v363_v53 = vadd.f32 %v356_v51, %v355_v50 }
 0x11f   : > { %v364_v55 = vadd.f32 %v363_v53, %v357_v52 }
 0x121   : > { %v365_v57 = vadd.f32 %v364_v55, %v358_v54 }
 0x123   : > { %v366_v59 = vadd.f32 %v365_v57, %v359_v56 }
 0x125   : > { %v367_v61 = vadd.f32 %v366_v59, %v360_v58 }
 0x127   : > { %v368_v63 = vadd.f32 %v367_v61, %v361_v60 }
 0x129   : > { %v369_v0 = vadd.f32 %v368_v63, %v362_v62 }
 0x12b   : > { %v370_v1 = vrot.slane %v369_v0, 4 }
 0x12d   : > { %v371_v2 = vadd.f32 %v370_v1, %v369_v0 }
 0x12f   : > { %v372_v3 = vrot.slane %v371_v2, 2 }
 0x131   : > { %v373_v4 = vadd.f32 %v372_v3, %v371_v2 }
 0x133   : > { %v374_v5 = vrot.slane %v373_v4, 1 }
 0x135   : > { %v375_v6 = vadd.f32 %v374_v5, %v373_v4 }
 0x137   : > { %377 = vst [vmem:[%s641_s15 + $0x1] sm:$0x1] %v375_v6 }
 0x138 PF: > { %s14_s12 = sadd.s32 1, %s560_s12  }
 0x139   : > { %p11_p4 = scmp.ge.s32.totalorder %s14_s12, 4  }
 0x13b   :  { %13 = sbr.rel (!%p11_p4) target bundleno = 1 (0x1), region = 70 }

// kernel: bottleneck_pallas.6
= control target key start
LH: loop header
LB: loop body
LE: loop exit
PB: predicated region body
PF: predicated region fallthrough
CT: control target
= control target key end

     0   :  { %s686_s18 = smov 0   ;;  %s758_s0 = inlined_call_operand.vmem [shape: f32[2,8,8,128], index: 0, kind: input, shape index: {}]   ;;  %s759_s1 = inlined_call_operand.vmem [shape: f32[1,128], index: 1, kind: input, shape index: {}]   ;;  %s760_s2 = inlined_call_operand.vmem [shape: f32[1,128], index: 2, kind: input, shape index: {}]   ;;  %s761_s3 = inlined_call_operand.vmem [shape: bf16[128,128], index: 3, kind: input, shape index: {}]   ;;  %s762_s4 = inlined_call_operand.vmem [shape: f32[2,8,8,128], index: 4, kind: output, shape index: {0}]   ;;  %s763_s5 = inlined_call_operand.vmem [shape: f32[2,2,128], index: 5, kind: output, shape index: {1}]  }
   0x1 LB: > { %s556_s19 = sadd.s32 4294967295, %s654_s18   ;;  %p560_p0 = scmp.ge.s32.totalorder %s654_s18, 1  ;;  %s654_s18 = sphi %s686_s18, %s16_s18  }
   0x2   : > { %p190_p1 = scmp.lt.s32.totalorder %s654_s18, 3 }
   0x4   : > { %p191_p2 = pnand %p560_p0, %p190_p1 }
   0x5   : > { %v640_v0 = vld [vmem:[%s761_s3] sm:$0xff] (!%p191_p2)   ;;  %p222_p3 = scmp.lt.s32.totalorder (!%p191_p2), %s556_s19, 1  ;;  %v641_v1 = vld [vmem:[%s761_s3 + $0x8] sm:$0xff] (!%p191_p2)   ;;  %v642_v2 = vld [vmem:[%s761_s3 + $0x10] sm:$0xff] (!%p191_p2)  }
   0x6   : > { %194 = sbr.rel (%p191_p2) target bundleno = 312 (0x138), region = 36  ;;  %592 = vmatprep.subr.bf16.mxu0 (!%p191_p2), %v640_v0  ;;  %616 = vmatprep.subr.bf16.mxu1 (!%p191_p2), %v640_v0  ;;  %v643_v3 = vld [vmem:[%s761_s3 + $0x18] sm:$0xff] (!%p191_p2)   ;;  %v566_v6 = vld [vmem:[%s759_s1] ss:$0 sm:$0xff] (!%p191_p2)  ;;  %v645_v27 = vld [vmem:[%s761_s3 + $0x28] sm:$0xff] (!%p191_p2)  }
   0x7   : > { %593 = vmatpush3.bf16.msra.mxu0 (!%p191_p2), %v640_v0  ;;  %624 = vmatpush3.bf16.msra.mxu1 (!%p191_p2), %v640_v0  ;;  %v567_v9 = vld [vmem:[%s760_s2] ss:$0 sm:$0xff] (!%p191_p2)  ;;  %v646_v34 = vld [vmem:[%s761_s3 + $0x30] sm:$0xff] (!%p191_p2)   ;;  %v647_v39 = vld [vmem:[%s761_s3 + $0x38] sm:$0xff] (!%p191_p2)  }
   0x8   : > { %594 = vmatprep.subr.bf16.mxu0 (!%p191_p2), %v641_v1  ;;  %617 = vmatprep.subr.bf16.mxu1 (!%p191_p2), %v641_v1  ;;  %v644_v15 = vld [vmem:[%s761_s3 + $0x20] sm:$0xff] (!%p191_p2)  }
   0xb   : > { %595 = vmatpush3.bf16.msra.mxu0 (!%p191_p2), %v641_v1  ;;  %625 = vmatpush3.bf16.msra.mxu1 (!%p191_p2), %v641_v1 }
   0xc   : > { %596 = vmatprep.subr.bf16.mxu0 (!%p191_p2), %v642_v2  ;;  %618 = vmatprep.subr.bf16.mxu1 (!%p191_p2), %v642_v2 }
   0xd   : > { %s765_s19 = smov (!%p222_p3, %s556_s19), 1 }
   0xe   : > { %s578_s26 = sshll.u32 %s765_s19, 6  ;;  %s565_s24 = sshll.u32 %s765_s19, 1 }
   0xf   : > { %s711_s29 = scalar_lea.vmem %s758_s0, %s578_s26  ;;  %597 = vmatpush3.bf16.msra.mxu0 %v642_v2  ;;  %626 = vmatpush3.bf16.msra.mxu1 %v642_v2  ;;  %s231_s23 = scalar_lea.vmem %s762_s4, %s578_s26 }
  0x10   : > { %v237_v4 = vld [vmem:[%s711_s29] sm:$0xff]  ;;  %v238_v5 = vld [vmem:[%s711_s29 + $0x8] sm:$0xff]  ;;  %598 = vmatprep.subr.bf16.mxu0 %v643_v3  ;;  %619 = vmatprep.subr.bf16.mxu1 %v643_v3  ;;  %v239_v20 = vld [vmem:[%s711_s29 + $0x10] sm:$0xff]  ;;  %s751_s27 = scalar_lea.vmem %s763_s5, %s565_s24 }
  0x11   : > { %v252_v7 = vmul.f32 %v566_v6, %v237_v4  ;;  %v253_v8 = vmul.f32 %v566_v6, %v238_v5  ;;  %v241_v10 = vld [vmem:[%s711_s29 + $0x20] sm:$0xff]  ;;  %v242_v11 = vld [vmem:[%s711_s29 + $0x28] sm:$0xff]  ;;  %v240_v23 = vld [vmem:[%s711_s29 + $0x18] sm:$0xff]  ;;  %v254_v29 = vmul.f32 %v566_v6, %v239_v20 }
  0x12   : > { %v256_v14 = vmul.f32 %v566_v6, %v241_v10  ;;  %v257_v16 = vmul.f32 %v566_v6, %v242_v11  ;;  %v243_v25 = vld [vmem:[%s711_s29 + $0x30] sm:$0xff]  ;;  %v244_v26 = vld [vmem:[%s711_s29 + $0x38] sm:$0xff]  ;;  %v255_v30 = vmul.f32 %v566_v6, %v240_v23 }
  0x13   : > { %v267_v12 = vadd.f32 %v567_v9, %v252_v7  ;;  %v268_v13 = vadd.f32 %v567_v9, %v253_v8  ;;  %599 = vmatpush3.bf16.msra.mxu0 %v643_v3  ;;  %627 = vmatpush3.bf16.msra.mxu1 %v643_v3  ;;  %v258_v32 = vmul.f32 %v566_v6, %v243_v25 }
  0x14   : > { %v271_v19 = vadd.f32 %v567_v9, %v256_v14  ;;  %v272_v21 = vadd.f32 %v567_v9, %v257_v16  ;;  %600 = vmatprep.subr.bf16.mxu0 %v644_v15  ;;  %620 = vmatprep.subr.bf16.mxu1 %v644_v15  ;;  %v259_v33 = vmul.f32 %v566_v6, %v244_v26 }
  0x15   : > { %v275_v17 = vmax.f32 %v267_v12, 0.0  ;;  %v276_v18 = vmax.f32 %v268_v13, 0.0  ;;  %v269_v35 = vadd.f32 %v567_v9, %v254_v29  ;;  %v270_v36 = vadd.f32 %v567_v9, %v255_v30 }
  0x16   : > { %v279_v24 = vmax.f32 %v271_v19, 0.0  ;;  %v280_v28 = vmax.f32 %v272_v21, 0.0  ;;  %v273_v37 = vadd.f32 %v567_v9, %v258_v32  ;;  %v274_v38 = vadd.f32 %v567_v9, %v259_v33 }
  0x17   : > { %v283_v22 = vpack.c.bf16 %v276_v18, %v275_v17  ;;  %601 = vmatpush3.bf16.msra.mxu0 %v644_v15  ;;  %628 = vmatpush3.bf16.msra.mxu1 %v644_v15  ;;  %v277_v40 = vmax.f32 %v269_v35, 0.0  ;;  %v278_v41 = vmax.f32 %v270_v36, 0.0 }
  0x18   : > { %v285_v31 = vpack.c.bf16 %v280_v28, %v279_v24  ;;  %602 = vmatprep.subr.bf16.mxu0 %v645_v27  ;;  %621 = vmatprep.subr.bf16.mxu1 %v645_v27  ;;  %v281_v42 = vmax.f32 %v273_v37, 0.0  ;;  %v282_v43 = vmax.f32 %v274_v38, 0.0 }
  0x19   : > { %608 = vmatprep.mubr.bf16.mxu0 %v283_v22  ;;  %v284_v44 = vpack.c.bf16 %v278_v41, %v277_v40 }
  0x1a   : > { %612 = vmatprep.mubr.bf16.mxu1 %v285_v31  ;;  %v286_v45 = vpack.c.bf16 %v282_v43, %v281_v42 }
  0x1b   : > { %603 = vmatpush3.bf16.msra.mxu0 %v645_v27  ;;  %629 = vmatpush3.bf16.msra.mxu1 %v645_v27 }
  0x1c   : > { %604 = vmatprep.subr.bf16.mxu0 %v646_v34  ;;  %622 = vmatprep.subr.bf16.mxu1 %v646_v34 }
  0x1f   : > { %605 = vmatpush3.bf16.msra.mxu0 %v646_v34  ;;  %630 = vmatpush3.bf16.msra.mxu1 %v646_v34 }
  0x20   : > { %606 = vmatprep.subr.bf16.mxu0 %v647_v39  ;;  %623 = vmatprep.subr.bf16.mxu1 %v647_v39 }
  0x23   : > { %607 = vmatpush3.bf16.msra.mxu0 %v647_v39  ;;  %631 = vmatpush3.bf16.msra.mxu1 %v647_v39 }
  0x26   : > { %609 = vmatmul.mubr.bf16.vlgmr.msra.gmra.mrb[0].mxu0 %v284_v44  ;;  %613 = vmatmul.mubr.bf16.vlgmr.msra.gmra.mrb[0].mxu1 %v286_v45 }
  0xf9   : > { %v610_v46 = vpop.f32.mrb[0].mxu0  ;;  %v614_v47 = vpop.f32.mrb[0].mxu1 }
  0xfa   : > { %418 = vst [vmem:[%s231_s23 + $0x10] sm:$0xff] %v610_v46  ;;  %v385_v48 = vpop.f32.mrb[1].mxu0  ;;  %422 = vst [vmem:[%s231_s23 + $0x30] sm:$0xff] %v614_v47  ;;  %v401_v49 = vpop.f32.mrb[1].mxu1 }
  0xfb   : > { %416 = vst [vmem:[%s231_s23] sm:$0xff] %v385_v48  ;;  %v611_v50 = vpop.f32.mrb[2].mxu0  ;;  %420 = vst [vmem:[%s231_s23 + $0x20] sm:$0xff] %v401_v49  ;;  %v615_v51 = vpop.f32.mrb[2].mxu1 }
  0xfc   : > { %419 = vst [vmem:[%s231_s23 + $0x18] sm:$0xff] %v611_v50  ;;  %v388_v52 = vpop.f32.mrb[3].mxu0  ;;  %423 = vst [vmem:[%s231_s23 + $0x38] sm:$0xff] %v615_v51  ;;  %v404_v53 = vpop.f32.mrb[3].mxu1 }
  0xfd   : > { %417 = vst [vmem:[%s231_s23 + $0x8] sm:$0xff] %v388_v52  ;;  %v424_v54 = vadd.f32 %v388_v52, %v385_v48  ;;  %421 = vst [vmem:[%s231_s23 + $0x28] sm:$0xff] %v404_v53 }
  0xff   : > { %v425_v55 = vadd.f32 %v610_v46, %v424_v54 }
 0x101   : > { %v426_v56 = vadd.f32 %v611_v50, %v425_v55 }
 0x103   : > { %v427_v57 = vadd.f32 %v426_v56, %v401_v49 }
 0x105   : > { %v428_v58 = vadd.f32 %v427_v57, %v404_v53 }
 0x107   : > { %v429_v59 = vadd.f32 %v614_v47, %v428_v58 }
 0x109   : > { %v430_v60 = vadd.f32 %v615_v51, %v429_v59 }
 0x10b   : > { %v431_v61 = vrot.slane %v430_v60, 4 }
 0x10d   : > { %v432_v62 = vadd.f32 %v431_v61, %v430_v60 }
 0x10f   : > { %v433_v63 = vrot.slane %v432_v62, 2 }
 0x111   : > { %v434_v0 = vadd.f32 %v433_v63, %v432_v62 }
 0x113   : > { %v435_v1 = vrot.slane %v434_v0, 1 }
 0x115   : > { %v436_v2 = vadd.f32 %v435_v1, %v434_v0 }
 0x117   : > { %v438_v3 = vmul.f32 0.015625, %v436_v2 }
 0x119   : > { %v439_v4 = vsub.f32 %v385_v48, %v438_v3  ;;  %v440_v5 = vsub.f32 %v388_v52, %v438_v3  ;;  %v441_v6 = vsub.f32 %v610_v46, %v438_v3  ;;  %v442_v7 = vsub.f32 %v611_v50, %v438_v3  ;;  %468 = vst [vmem:[%s751_s27] sm:$0x1] %v438_v3 }
 0x11a   : > { %v443_v8 = vsub.f32 %v401_v49, %v438_v3  ;;  %v444_v9 = vsub.f32 %v404_v53, %v438_v3  ;;  %v445_v10 = vsub.f32 %v614_v47, %v438_v3  ;;  %v446_v11 = vsub.f32 %v615_v51, %v438_v3 }
 0x11b   : > { %v447_v12 = vmul.f32 %v439_v4, %v439_v4  ;;  %v448_v13 = vmul.f32 %v440_v5, %v440_v5  ;;  %v449_v14 = vmul.f32 %v441_v6, %v441_v6  ;;  %v450_v16 = vmul.f32 %v442_v7, %v442_v7 }
 0x11c   : > { %v451_v18 = vmul.f32 %v443_v8, %v443_v8  ;;  %v452_v20 = vmul.f32 %v444_v9, %v444_v9  ;;  %v453_v22 = vmul.f32 %v445_v10, %v445_v10  ;;  %v454_v24 = vmul.f32 %v446_v11, %v446_v11 }
 0x11d   : > { %v455_v15 = vadd.f32 %v448_v13, %v447_v12 }
 0x11f   : > { %v456_v17 = vadd.f32 %v455_v15, %v449_v14 }
 0x121   : > { %v457_v19 = vadd.f32 %v456_v17, %v450_v16 }
 0x123   : > { %v458_v21 = vadd.f32 %v457_v19, %v451_v18 }
 0x125   : > { %v459_v23 = vadd.f32 %v458_v21, %v452_v20 }
 0x127   : > { %v460_v25 = vadd.f32 %v459_v23, %v453_v22 }
 0x129   : > { %v461_v26 = vadd.f32 %v460_v25, %v454_v24 }
 0x12b   : > { %v462_v27 = vrot.slane %v461_v26, 4 }
 0x12d   : > { %v463_v28 = vadd.f32 %v462_v27, %v461_v26 }
 0x12f   : > { %v464_v29 = vrot.slane %v463_v28, 2 }
 0x131   : > { %v465_v30 = vadd.f32 %v464_v29, %v463_v28 }
 0x133   : > { %v466_v31 = vrot.slane %v465_v30, 1 }
 0x135   : > { %v467_v32 = vadd.f32 %v466_v31, %v465_v30 }
 0x137   : > { %469 = vst [vmem:[%s751_s27 + $0x1] sm:$0x1] %v467_v32 }
 0x138 PF: > { %s16_s18 = sadd.s32 1, %s654_s18  }
 0x139   : > { %p13_p4 = scmp.ge.s32.totalorder %s16_s18, 4  }
 0x13b   :  { %15 = sbr.rel (!%p13_p4) target bundleno = 1 (0x1), region = 78 }

// kernel: bottleneck_pallas.7
= control target key start
LH: loop header
LB: loop body
LE: loop exit
PB: predicated region body
PF: predicated region fallthrough
CT: control target
= control target key end

     0   :  { %s414_s15 = smov 0   ;;  %s455_s0 = inlined_call_operand.vmem [shape: f32[2,8,8,128], index: 0, kind: input, shape index: {}]   ;;  %s456_s1 = inlined_call_operand.vmem [shape: f32[1,128], index: 1, kind: input, shape index: {}]   ;;  %s457_s2 = inlined_call_operand.vmem [shape: f32[1,128], index: 2, kind: input, shape index: {}]   ;;  %s458_s3 = inlined_call_operand.vmem [shape: f32[2,8,8,128], index: 3, kind: input, shape index: {}]   ;;  %s459_s4 = inlined_call_operand.vmem [shape: f32[2,8,8,128], index: 4, kind: output, shape index: {}]  }
   0x1 LB: > { %s355_s16 = sadd.s32 4294967295, %s387_s15   ;;  %p359_p0 = scmp.ge.s32.totalorder %s387_s15, 1  ;;  %s387_s15 = sphi %s414_s15, %s14_s15  }
   0x2   : > { %p172_p1 = scmp.lt.s32.totalorder %s387_s15, 3 }
   0x4   : > { %p173_p2 = pnand %p359_p0, %p172_p1 }
   0x5   : > { %p203_p3 = scmp.lt.s32.totalorder (!%p173_p2), %s355_s16, 1  ;;  %v366_v0 = vld [vmem:[%s456_s1] ss:$0 sm:$0xff] (!%p173_p2) }
   0x6   : > { %176 = sbr.rel (%p173_p2) target bundleno = 31 (0x1f), region = 36  ;;  %v367_v2 = vld [vmem:[%s457_s2] ss:$0 sm:$0xff] (!%p173_p2) }
   0xd   : > { %s461_s16 = smov (!%p203_p3, %s355_s16), 1 }
   0xe   : > { %s422_s17 = sshll.u32 %s461_s16, 6 }
   0xf   : > { %s207_s22 = scalar_lea.vmem %s455_s0, %s422_s17  ;;  %s435_s25 = scalar_lea.vmem %s458_s3, %s422_s17 }
  0x10   : > { %v218_v1 = vld [vmem:[%s207_s22] sm:$0xff]  ;;  %v219_v3 = vld [vmem:[%s207_s22 + $0x8] sm:$0xff]  ;;  %v220_v7 = vld [vmem:[%s207_s22 + $0x10] sm:$0xff]  ;;  %s217_s30 = scalar_lea.vmem %s459_s4, %s422_s17 }
  0x11   : > { %v233_v4 = vmul.f32 %v366_v0, %v218_v1  ;;  %v256_v5 = vld [vmem:[%s435_s25] sm:$0xff]  ;;  %v234_v6 = vmul.f32 %v366_v0, %v219_v3  ;;  %v257_v8 = vld [vmem:[%s435_s25 + $0x8] sm:$0xff]  ;;  %v235_v9 = vmul.f32 %v366_v0, %v220_v7  ;;  %v221_v10 = vld [vmem:[%s207_s22 + $0x18] sm:$0xff] }
  0x12   : > { %v222_v11 = vld [vmem:[%s207_s22 + $0x20] sm:$0xff]  ;;  %v258_v14 = vld [vmem:[%s435_s25 + $0x10] sm:$0xff]  ;;  %v236_v15 = vmul.f32 %v366_v0, %v221_v10  ;;  %v259_v16 = vld [vmem:[%s435_s25 + $0x18] sm:$0xff] }
  0x13   : > { %v248_v12 = vadd.f32 %v367_v2, %v233_v4  ;;  %v249_v13 = vadd.f32 %v367_v2, %v234_v6  ;;  %v237_v17 = vmul.f32 %v366_v0, %v222_v11  ;;  %v223_v18 = vld [vmem:[%s207_s22 + $0x28] sm:$0xff]  ;;  %v250_v19 = vadd.f32 %v367_v2, %v235_v9  ;;  %v260_v20 = vld [vmem:[%s435_s25 + $0x20] sm:$0xff]  ;;  %v224_v22 = vld [vmem:[%s207_s22 + $0x30] sm:$0xff] }
  0x14   : > { %v238_v21 = vmul.f32 %v366_v0, %v223_v18  ;;  %v225_v23 = vld [vmem:[%s207_s22 + $0x38] sm:$0xff]  ;;  %v251_v26 = vadd.f32 %v367_v2, %v236_v15  ;;  %v261_v28 = vld [vmem:[%s435_s25 + $0x28] sm:$0xff]  ;;  %v239_v31 = vmul.f32 %v366_v0, %v224_v22  ;;  %v262_v37 = vld [vmem:[%s435_s25 + $0x30] sm:$0xff] }
  0x15   : > { %v264_v24 = vadd.f32 %v256_v5, %v248_v12  ;;  %v265_v25 = vadd.f32 %v257_v8, %v249_v13  ;;  %v252_v27 = vadd.f32 %v367_v2, %v237_v17  ;;  %v266_v29 = vadd.f32 %v258_v14, %v250_v19  ;;  %v263_v38 = vld [vmem:[%s435_s25 + $0x38] sm:$0xff] }
  0x16   : > { %v253_v30 = vadd.f32 %v367_v2, %v238_v21  ;;  %v240_v32 = vmul.f32 %v366_v0, %v225_v23  ;;  %v267_v35 = vadd.f32 %v259_v16, %v251_v26  ;;  %v254_v41 = vadd.f32 %v367_v2, %v239_v31 }
  0x17   : > { %v272_v33 = vmax.f32 %v264_v24, 0.0  ;;  %v273_v34 = vmax.f32 %v265_v25, 0.0  ;;  %v268_v36 = vadd.f32 %v260_v20, %v252_v27  ;;  %v274_v39 = vmax.f32 %v266_v29, 0.0 }
  0x18   : > { %v269_v40 = vadd.f32 %v261_v28, %v253_v30  ;;  %v255_v42 = vadd.f32 %v367_v2, %v240_v32  ;;  %v275_v43 = vmax.f32 %v267_v35, 0.0  ;;  %v270_v46 = vadd.f32 %v262_v37, %v254_v41 }
  0x19   : > { %280 = vst [vmem:[%s217_s30] sm:$0xff] %v272_v33  ;;  %281 = vst [vmem:[%s217_s30 + $0x8] sm:$0xff] %v273_v34  ;;  %v276_v44 = vmax.f32 %v268_v36, 0.0 }
  0x1a   : > { %282 = vst [vmem:[%s217_s30 + $0x10] sm:$0xff] %v274_v39  ;;  %v277_v45 = vmax.f32 %v269_v40, 0.0  ;;  %v271_v47 = vadd.f32 %v263_v38, %v255_v42  ;;  %283 = vst [vmem:[%s217_s30 + $0x18] sm:$0xff] %v275_v43  ;;  %v278_v48 = vmax.f32 %v270_v46, 0.0 }
  0x1b   : > { %284 = vst [vmem:[%s217_s30 + $0x20] sm:$0xff] %v276_v44 }
  0x1c   : > { %285 = vst [vmem:[%s217_s30 + $0x28] sm:$0xff] %v277_v45  ;;  %v279_v49 = vmax.f32 %v271_v47, 0.0  ;;  %286 = vst [vmem:[%s217_s30 + $0x30] sm:$0xff] %v278_v48 }
  0x1e   : > { %287 = vst [vmem:[%s217_s30 + $0x38] sm:$0xff] %v279_v49 }
  0x1f PF: > { %s14_s15 = sadd.s32 1, %s387_s15  }
  0x20   : > { %p11_p4 = scmp.ge.s32.totalorder %s14_s15, 4  }
  0x22   :  { %13 = sbr.rel (!%p11_p4) target bundleno = 1 (0x1), region = 69 }

// kernel: bottleneck_pallas.5
= control target key start
LH: loop header
LB: loop body
LE: loop exit
PB: predicated region body
PF: predicated region fallthrough
CT: control target
= control target key end

     0   :  { %s2102_s18 = smov 0   ;;  %s2899_s0 = inlined_call_operand.vmem [shape: f32[2,8,8,128], index: 0, kind: input, shape index: {}]   ;;  %s2900_s1 = inlined_call_operand.vmem [shape: f32[1,128], index: 1, kind: input, shape index: {}]   ;;  %s2901_s2 = inlined_call_operand.vmem [shape: f32[1,128], index: 2, kind: input, shape index: {}]   ;;  %s2902_s3 = inlined_call_operand.vmem [shape: bf16[1152,128], index: 3, kind: input, shape index: {}]   ;;  %s2903_s4 = inlined_call_operand.vmem [shape: f32[2,8,8,128], index: 4, kind: output, shape index: {0}]   ;;  %s2904_s5 = inlined_call_operand.vmem [shape: f32[2,2,128], index: 5, kind: output, shape index: {1}]  }
   0x1 LB: > { %s1634_s19 = sadd.s32 4294967295, %s2069_s18   ;;  %p1638_p0 = scmp.ge.s32.totalorder %s2069_s18, 1  ;;  %s2069_s18 = sphi %s2102_s18, %s16_s18  }
   0x2   : > { %p190_p1 = scmp.lt.s32.totalorder %s2069_s18, 3 }
   0x4   : > { %p191_p2 = pnand %p1638_p0, %p190_p1 }
   0x5   : > { %v1991_v0 = vld [vmem:[%s2902_s3 + $0x40] sm:$0xff] (!%p191_p2)   ;;  %v1995_v4 = vld [vmem:[%s2902_s3 + $0x48] sm:$0xff] (!%p191_p2)   ;;  %v1999_v8 = vld [vmem:[%s2902_s3 + $0x50] sm:$0xff] (!%p191_p2)   ;;  %p222_p3 = scmp.lt.s32.totalorder (!%p191_p2), %s1634_s19, 1  ;;  %v283_v16 = vlaneseq (!%p191_p2)  ;;  %v2071_v23 = vmov (!%p191_p2), 0.0   ;;  %vm2909_vm0 = vcmask (!%p191_p2), 1040384  }
   0x6   : > { %194 = sbr.rel (%p191_p2) target bundleno = 381 (0x17d), region = 36  ;;  %v1992_v1 = vld [vmem:[%s2902_s3 + $0xc0] sm:$0xff] (!%p191_p2)   ;;  %1770 = vmatprep.subr.bf16.mxu0 (!%p191_p2), %v1991_v0  ;;  %v1996_v5 = vld [vmem:[%s2902_s3 + $0xc8] sm:$0xff] (!%p191_p2)   ;;  %v2000_v9 = vld [vmem:[%s2902_s3 + $0xd0] sm:$0xff] (!%p191_p2)   ;;  %v2182_v24 = vrot.slane (!%p191_p2), %v2071_v23, 7  ;;  %v2192_v27 = vrot.slane (!%p191_p2), %v2071_v23, 1 }
   0x7   : > { %v1993_v2 = vld [vmem:[%s2902_s3] sm:$0xff] (!%p191_p2)   ;;  %1810 = vmatprep.subr.bf16.mxu1 (!%p191_p2), %v1992_v1  ;;  %v1997_v6 = vld [vmem:[%s2902_s3 + $0x8] sm:$0xff] (!%p191_p2)   ;;  %v2001_v10 = vld [vmem:[%s2902_s3 + $0x10] sm:$0xff] (!%p191_p2)   ;;  %v2176_v21 = vshrl.u32 (!%p191_p2), %v283_v16, 7  ;;  %vm2906_vm6 = vcmask (!%p191_p2), 1046528   ;;  %vm543_vm7 = vcmask (!%p191_p2), 1043456  }
   0x8   : > { %v1994_v3 = vld [vmem:[%s2902_s3 + $0x80] sm:$0xff] (!%p191_p2)   ;;  %1771 = vmatpush3.bf16.msra.mxu0 (!%p191_p2), %v1993_v2  ;;  %v1998_v7 = vld [vmem:[%s2902_s3 + $0x88] sm:$0xff] (!%p191_p2)   ;;  %v2002_v11 = vld [vmem:[%s2902_s3 + $0x90] sm:$0xff] (!%p191_p2)  }
   0x9   : > { %1811 = vmatpush3.bf16.msra.mxu1 (!%p191_p2), %v1994_v3  ;;  %1772 = vmatprep.subr.bf16.mxu0 (!%p191_p2), %v1995_v4  ;;  %v2003_v12 = vld [vmem:[%s2902_s3 + $0x58] sm:$0xff] (!%p191_p2)   ;;  %v2007_v17 = vld [vmem:[%s2902_s3 + $0x60] sm:$0xff] (!%p191_p2)   ;;  %v2011_v22 = vld [vmem:[%s2902_s3 + $0x68] sm:$0xff] (!%p191_p2)   ;;  %v2198_v29 = vadd.s32 (!%p191_p2), 8, %v2176_v21  ;;  %v2204_v31 = vadd.s32 (!%p191_p2), 16, %v2176_v21  ;;  %v2210_v33 = vadd.s32 (!%p191_p2), 24, %v2176_v21 }
   0xa   : > { %1812 = vmatprep.subr.bf16.mxu1 (!%p191_p2), %v1996_v5  ;;  %v2004_v13 = vld [vmem:[%s2902_s3 + $0xd8] sm:$0xff] (!%p191_p2)   ;;  %v2008_v18 = vld [vmem:[%s2902_s3 + $0xe0] sm:$0xff] (!%p191_p2)   ;;  %v2012_v25 = vld [vmem:[%s2902_s3 + $0xe8] sm:$0xff] (!%p191_p2)   ;;  %v298_v35 = vand.u32 (!%p191_p2), 7, %v2176_v21  ;;  %v2276_v54 = vadd.s32 (!%p191_p2), 32, %v2176_v21  ;;  %v2284_v58 = vadd.s32 (!%p191_p2), 40, %v2176_v21 }
   0xb   : > { %v2005_v14 = vld [vmem:[%s2902_s3 + $0x18] sm:$0xff] (!%p191_p2)   ;;  %v2009_v19 = vld [vmem:[%s2902_s3 + $0x20] sm:$0xff] (!%p191_p2)   ;;  %v2013_v26 = vld [vmem:[%s2902_s3 + $0x28] sm:$0xff] (!%p191_p2)   ;;  %v305_v37 = vand.u32 (!%p191_p2), 7, %v2198_v29  ;;  %v312_v39 = vand.u32 (!%p191_p2), 7, %v2204_v31  ;;  %v319_v41 = vand.u32 (!%p191_p2), 7, %v2210_v33 }
   0xc   : > { %1773 = vmatpush3.bf16.msra.mxu0 (!%p191_p2), %v1997_v6  ;;  %v2006_v15 = vld [vmem:[%s2902_s3 + $0x98] sm:$0xff] (!%p191_p2)   ;;  %v2010_v20 = vld [vmem:[%s2902_s3 + $0xa0] sm:$0xff] (!%p191_p2)   ;;  %v2014_v28 = vld [vmem:[%s2902_s3 + $0xa8] sm:$0xff] (!%p191_p2)   ;;  %vm2241_vm1 = vcmp.gt.s32.totalorder (!%p191_p2), %v298_v35, 0  ;;  %vm2287_vm5 = vcmp.lt.s32.totalorder (!%p191_p2), %v298_v35, 7  ;;  %v326_v2 = vand.u32 (!%p191_p2), 7, %v2276_v54 }
   0xd   : > { %1813 = vmatpush3.bf16.msra.mxu1 %v1998_v7  ;;  %1774 = vmatprep.subr.bf16.mxu0 %v1999_v8  ;;  %s2971_s19 = smov (!%p222_p3, %s1634_s19), 1  ;;  %v2015_v30 = vld [vmem:[%s2902_s3 + $0x70] sm:$0xff]   ;;  %v2019_v38 = vld [vmem:[%s2902_s3 + $0x78] sm:$0xff]   ;;  %v2249_v46 = vld [vmem:[%s2900_s1] ss:$0 sm:$0xff]  ;;  %vm2256_vm2 = vcmp.gt.s32.totalorder %v305_v37, 0 }
   0xe   : > { %1814 = vmatprep.subr.bf16.mxu1 %v2000_v9  ;;  %s1768_s16 = sshll.u32 %s2971_s19, 6  ;;  %v2016_v32 = vld [vmem:[%s2902_s3 + $0xf0] sm:$0xff]   ;;  %v2020_v40 = vld [vmem:[%s2902_s3 + $0xf8] sm:$0xff]   ;;  %v2254_v47 = vld [vmem:[%s2901_s2] ss:$0 sm:$0xff]  ;;  %vm2265_vm3 = vcmp.gt.s32.totalorder %v312_v39, 0 }
   0xf   : > { %v2017_v34 = vld [vmem:[%s2902_s3 + $0x30] sm:$0xff]   ;;  %s2232_s12 = scalar_lea.vmem %s2899_s0, %s1768_s16  ;;  %v2021_v42 = vld [vmem:[%s2902_s3 + $0x38] sm:$0xff]   ;;  %vm2271_vm4 = vcmp.gt.s32.totalorder %v319_v41, 0  ;;  %v463_v57 = vsel %vm2241_vm1, %v2182_v24, 0.0  ;;  %v2023_v61 = vld [vmem:[%s2902_s3 + $0x140] sm:$0xff]   ;;  %v333_v5 = vand.u32 7, %v2284_v58  ;;  %s2878_s20 = scalar_lea.vmem %s2903_s4, %s1768_s16 }
  0x10   : > { %1775 = vmatpush3.bf16.msra.mxu0 %v2001_v10  ;;  %v2018_v36 = vld [vmem:[%s2902_s3 + $0xb0] sm:$0xff]   ;;  %v2022_v43 = vld [vmem:[%s2902_s3 + $0xb8] sm:$0xff]   ;;  %v237_v45 = vld [vmem:[%s2232_s12] sm:$0xff]  ;;  %v2306_v6 = vadd.s32 48, %v2176_v21  ;;  %vm2324_vm9 = vcmp.lt.s32.totalorder %v305_v37, 7  ;;  %vm2362_vm10 = vcmp.gt.s32.totalorder %v326_v2, 0 }
  0x11   : > { %1815 = vmatpush3.bf16.msra.mxu1 %v2002_v11  ;;  %1776 = vmatprep.subr.bf16.mxu0 %v2003_v12  ;;  %v252_v49 = vmul.f32 %v2249_v46, %v237_v45  ;;  %v238_v50 = vld [vmem:[%s2232_s12 + $0x8] sm:$0xff]  ;;  %v239_v51 = vld [vmem:[%s2232_s12 + $0x10] sm:$0xff]  ;;  %v2024_v0 = vld [vmem:[%s2902_s3 + $0x1c0] sm:$0xff]   ;;  %vm2379_vm12 = vcmp.gt.s32.totalorder %v333_v5, 0  ;;  %vm2395_vm13 = vcmp.lt.s32.totalorder %v312_v39, 7  ;;  %vm2425_vm14 = vcmp.lt.s32.totalorder %v319_v41, 7 }
  0x12   : > { %1816 = vmatprep.subr.bf16.mxu1 %v2004_v13  ;;  %v253_v55 = vmul.f32 %v2249_v46, %v238_v50  ;;  %v254_v56 = vmul.f32 %v2249_v46, %v239_v51  ;;  %vm1718_vm8 = vmpackc.low %vm2256_vm2, %vm2241_vm1  ;;  %v2319_v13 = vadd.s32 56, %v2176_v21  ;;  %v241_v35 = vld [vmem:[%s2232_s12 + $0x20] sm:$0xff]  ;;  %v2029_v45 = vld [vmem:[%s2902_s3 + $0x108] sm:$0xff]   ;;  %s1643_s16 = sshll.u32 %s2971_s19, 1 }
  0x13   : > { %v267_v59 = vadd.f32 %v2254_v47, %v252_v49  ;;  %vm1730_vm11 = vmpackc.low %vm2324_vm9, %vm2287_vm5  ;;  %v2930_v49 = vmov 0  ;;  %v2026_v31 = vld [vmem:[%s2902_s3 + $0x180] sm:$0xff]   ;;  %v2033_v41 = vld [vmem:[%s2902_s3 + $0x110] sm:$0xff]   ;;  %s2892_s23 = scalar_lea.vmem %s2904_s5, %s1643_s16 }
  0x14   : > { %1777 = vmatpush3.bf16.msra.mxu0 %v2005_v14  ;;  %v268_v62 = vadd.f32 %v2254_v47, %v253_v55  ;;  %v269_v63 = vadd.f32 %v2254_v47, %v254_v56  ;;  %v2931_v49 = vsel %vm2395_vm13, 4294967295, %v2930_v49  ;;  %v256_v55 = vmul.f32 %v2249_v46, %v241_v35  ;;  %v2031_v56 = vld [vmem:[%s2902_s3 + $0x150] sm:$0xff]   ;;  %vm2905_vm15 = vmpackc.low %vm2271_vm4, %vm2265_vm3  ;;  %v2036_v54 = vld [vmem:[%s2902_s3 + $0x1d8] sm:$0xff]  }
  0x15   : > { %1817 = vmatpush3.bf16.msra.mxu1 %v2006_v15  ;;  %1778 = vmatprep.subr.bf16.mxu0 %v2007_v17  ;;  %v275_v1 = vmax.f32 %v267_v59, 0.0  ;;  %v2025_v17 = vld [vmem:[%s2902_s3 + $0x100] sm:$0xff]   ;;  %v2060_v52 = vld [vmem:[%s2902_s3 + $0x228] sm:$0xff]  }
  0x16   : > { %1818 = vmatprep.subr.bf16.mxu1 %v2008_v18  ;;  %v2300_v3 = vmax.f32 %v268_v62, 0.0  ;;  %v2302_v4 = vmax.f32 %v269_v63, 0.0  ;;  %v2028_v62 = vld [vmem:[%s2902_s3 + $0x1c8] sm:$0xff]   ;;  %v271_v63 = vadd.f32 %v2254_v47, %v256_v55  ;;  %v2936_v55 = vmov 0  ;;  %v2042_v15 = vld [vmem:[%s2902_s3 + $0x1a0] sm:$0xff]  }
  0x17   : > { %v436_v7 = vrot.slane %v275_v1, 7  ;;  %v2309_v8 = vpack.c.bf16 %v275_v1, %v2071_v23  ;;  %v495_v9 = vrot.slane %v275_v1, 1 }
  0x18   : > { %1779 = vmatpush3.bf16.msra.mxu0 %v2009_v19  ;;  %v438_v10 = vrot.slane %v2300_v3, 7  ;;  %v440_v11 = vrot.slane %v2302_v4, 7  ;;  %v497_v12 = vrot.slane %v2300_v3, 1  ;;  %v2337_v18 = vpack.c.bf16 %v2302_v4, %v2300_v3 }
  0x19   : > { %1819 = vmatpush3.bf16.msra.mxu1 %v2010_v20  ;;  %1780 = vmatprep.subr.bf16.mxu0 %v2011_v22  ;;  %v437_v14 = vsel %vm2909_vm0, %v2182_v24, %v436_v7  ;;  %v2330_v16 = vsel %vm2906_vm6, %v2192_v27, %v495_v9  ;;  %v499_v33 = vrot.slane %v2302_v4, 1 }
  0x1a   : > { %1820 = vmatprep.subr.bf16.mxu1 %v2012_v25  ;;  %1201 = vmatprep.mubr.bf16.mxu0 %v2309_v8  ;;  %v439_v19 = vsel %vm2909_vm0, %v436_v7, %v438_v10  ;;  %v441_v20 = vsel %vm2909_vm0, %v438_v10, %v440_v11  ;;  %v464_v22 = vsel %vm2256_vm2, %v437_v14, 0.0  ;;  %v1719_v25 = vpack.c.bf16 %v437_v14, %v2182_v24 }
  0x1b   : > { %v466_v29 = vsel %vm2271_vm4, %v441_v20, 0.0  ;;  %v2450_v14 = vmax.f32 %v271_v63, 0.0 }
  0x1c   : > { %1781 = vmatpush3.bf16.msra.mxu0 %v2013_v26  ;;  %v2027_v26 = vld [vmem:[%s2902_s3 + $0x148] sm:$0xff]  }
  0x1d   : > { %1821 = vmatpush3.bf16.msra.mxu1 %v2014_v28  ;;  %1782 = vmatprep.subr.bf16.mxu0 %v2015_v30  ;;  %v465_v28 = vsel %vm2265_vm3, %v439_v19, 0.0  ;;  %v473_v30 = vpack.c.bf16 %v464_v22, %v463_v57  ;;  %v562_v57 = vrot.slane %v2309_v8, 4  ;;  %v503_v58 = vrot.slane %v2450_v14, 1 }
  0x1e   : > { %1822 = vmatprep.subr.bf16.mxu1 %v2016_v32  ;;  %v2356_v32 = vsel %vm2906_vm6, %v495_v9, %v497_v12  ;;  %v2366_v37 = vpack.c.bf16 %v466_v29, %v465_v28  ;;  %v2030_v9 = vld [vmem:[%s2902_s3 + $0x188] sm:$0xff]   ;;  %v444_v28 = vrot.slane %v2450_v14, 7  ;;  %v2037_v29 = vld [vmem:[%s2902_s3 + $0x118] sm:$0xff]  }
  0x1f   : > { %v544_v44 = vrot.slane %v473_v30, 4  ;;  %v1731_v51 = vpack.c.bf16 %v2356_v32, %v2330_v16  ;;  %v524_v7 = vsel %vm2324_vm9, %v2356_v32, 0.0 }
  0x20   : > { %1783 = vmatpush3.bf16.msra.mxu0 %v2017_v34  ;;  %v240_v34 = vld [vmem:[%s2232_s12 + $0x18] sm:$0xff]  ;;  %v545_v50 = vrot.slane %v2366_v37, 4  ;;  %v2045_v37 = vld [vmem:[%s2902_s3 + $0x128] sm:$0xff]  }
  0x21   : > { %1823 = vmatpush3.bf16.msra.mxu1 %v2018_v36  ;;  %1784 = vmatprep.subr.bf16.mxu0 %v2019_v38  ;;  %v255_v48 = vmul.f32 %v2249_v46, %v240_v34  ;;  %v242_v34 = vld [vmem:[%s2232_s12 + $0x28] sm:$0xff]  ;;  %v2062_v38 = vld [vmem:[%s2902_s3 + $0x238] sm:$0xff]  }
  0x22   : > { %1824 = vmatprep.subr.bf16.mxu1 %v2020_v40  ;;  %v340_v40 = vand.u32 7, %v2306_v6  ;;  %v546_v59 = vsel %vm543_vm7, %v544_v44, %v545_v50  ;;  %v2488_v44 = vsel %vm2906_vm6, %v497_v12, %v499_v33  ;;  %v2048_v6 = vld [vmem:[%s2902_s3 + $0x1f0] sm:$0xff]  }
  0x23   : > { %v270_v39 = vadd.f32 %v2254_v47, %v255_v48  ;;  %1266 = vmatprep.mubr.bf16.mxu1 %v546_v59  ;;  %v243_v48 = vld [vmem:[%s2232_s12 + $0x30] sm:$0xff] }
  0x24   : > { %1785 = vmatpush3.bf16.msra.mxu0 %v2021_v42  ;;  %v347_v42 = vand.u32 7, %v2319_v13  ;;  %vm2462_vm1 = vcmp.gt.s32.totalorder %v340_v40, 0 }
  0x25   : > { %1825 = vmatpush3.bf16.msra.mxu1 %v2022_v43  ;;  %1850 = vmatprep.subr.bf16.mxu0 %v2023_v61  ;;  %v2386_v43 = vadd.s32 64, %v2176_v21  ;;  %v523_v61 = vsel %vm2287_vm5, %v2330_v16, 0.0  ;;  %v2435_v10 = vmax.f32 %v270_v39, 0.0 }
  0x26   : > { %1890 = vmatprep.subr.bf16.mxu1 %v2024_v0  ;;  %v2421_v0 = vpack.c.bf16 %v441_v20, %v439_v19  ;;  %v2035_v19 = vld [vmem:[%s2902_s3 + $0x158] sm:$0xff]   ;;  %vm2497_vm2 = vcmp.gt.s32.totalorder %v347_v42, 0 }
  0x27   : > { %1720 = vmatmul.mubr.msk.bf16.vlgmr.msra.gmra.mrb[0].mxu0 %vm1718_vm8, %v1719_v25  ;;  %v442_v20 = vrot.slane %v2435_v10, 7  ;;  %v501_v22 = vrot.slane %v2435_v10, 1  ;;  %v2934_v25 = vmov 0  ;;  %v2479_v30 = vpack.c.bf16 %v2450_v14, %v2435_v10  ;;  %v2044_v10 = vld [vmem:[%s2902_s3 + $0x1e8] sm:$0xff]  }
  0x28   : > { %1851 = vmatpush3.bf16.msra.mxu0 %v2025_v17  ;;  %1209 = vmatprep.mubr.bf16.mxu0 %v2337_v18  ;;  %v2032_v17 = vld [vmem:[%s2902_s3 + $0x1d0] sm:$0xff]   ;;  %v2935_v25 = vsel %vm2462_vm1, 4294967295, %v2934_v25  ;;  %v2937_v55 = vsel %vm2497_vm2, 4294967295, %v2936_v55  ;;  %vm2510_vm8 = vcmp.lt.s32.totalorder %v326_v2, 7  ;;  %v258_v2 = vmul.f32 %v2249_v46, %v243_v48 }
  0x29   : > { %1852 = vmatprep.subr.bf16.mxu0 %v2027_v26  ;;  %1732 = vmatmul.mubr.msk.bf16.vlgmr.msra.gmra.mrb[0].mxu1 %vm1730_vm11, %v1731_v51  ;;  %v563_v26 = vrot.slane %v2337_v18, 4  ;;  %v443_v35 = vsel %vm2909_vm0, %v440_v11, %v442_v20  ;;  %v257_v51 = vmul.f32 %v2249_v46, %v242_v34  ;;  %v445_v4 = vsel %vm2909_vm0, %v442_v20, %v444_v28  ;;  %v2043_v34 = vld [vmem:[%s2902_s3 + $0x168] sm:$0xff]  }
  0x2a   : > { %1891 = vmatpush3.bf16.msra.mxu1 %v2026_v31  ;;  %v467_v3 = vsel %vm2362_vm10, %v443_v35, 0.0  ;;  %v525_v11 = vsel %vm2395_vm13, %v2488_v44, 0.0  ;;  %v2518_v31 = vadd.s32 72, %v2176_v21  ;;  %v468_v39 = vsel %vm2379_vm12, %v445_v4, 0.0 }
  0x2b   : > { %1892 = vmatprep.subr.bf16.mxu1 %v2028_v62  ;;  %v502_v59 = vsel %vm2906_vm6, %v499_v33, %v501_v22  ;;  %v272_v62 = vadd.f32 %v2254_v47, %v257_v51  ;;  %vm2532_vm11 = vcmp.lt.s32.totalorder %v333_v5, 7  ;;  %v2536_v63 = vpack.c.bf16 %v468_v39, %v467_v3  ;;  %v2038_v33 = vld [vmem:[%s2902_s3 + $0x198] sm:$0xff]   ;;  %v2041_v5 = vld [vmem:[%s2902_s3 + $0x120] sm:$0xff]   ;;  %vm2908_vm6 = vmpackc.low %vm2425_vm14, %vm2395_vm13 }
  0x2c   : > { %1853 = vmatpush3.bf16.msra.mxu0 %v2029_v45  ;;  %v2034_v45 = vld [vmem:[%s2902_s3 + $0x190] sm:$0xff]   ;;  %v2040_v51 = vld [vmem:[%s2902_s3 + $0x1e0] sm:$0xff]   ;;  %v244_v39 = vld [vmem:[%s2232_s12 + $0x38] sm:$0xff] }
  0x2d   : > { %1854 = vmatprep.subr.bf16.mxu0 %v2031_v56  ;;  %v2039_v56 = vld [vmem:[%s2902_s3 + $0x160] sm:$0xff]   ;;  %v547_v20 = vrot.slane %v2536_v63, 4  ;;  %v259_v16 = vmul.f32 %v2249_v46, %v244_v39  ;;  %v2047_v46 = vld [vmem:[%s2902_s3 + $0x170] sm:$0xff]  }
  0x2e   : > { %1893 = vmatpush3.bf16.msra.mxu1 %v2030_v9  ;;  %v2538_v9 = vpack.c.bf16 %v445_v4, %v443_v35 }
  0x2f   : > { %1723 = vmatmul.mubr.msk.bf16.gmra.mrb[4].mxu0 %vm2905_vm15, %v2421_v0  ;;  %1894 = vmatprep.subr.bf16.mxu1 %v2032_v17  ;;  %vm2907_vm15 = vmpackc.low %vm2379_vm12, %vm2362_vm10  ;;  %v354_v17 = vand.u32 7, %v2386_v43  ;;  %v548_v4 = vsel %vm543_vm7, %v545_v50, %v547_v20 }
  0x30   : > { %1855 = vmatpush3.bf16.msra.mxu0 %v2033_v41  ;;  %1217 = vmatprep.mubr.bf16.mxu0 %v2479_v30  ;;  %v273_v41 = vadd.f32 %v2254_v47, %v258_v2 }
  0x31   : > { %1856 = vmatprep.subr.bf16.mxu0 %v2035_v19  ;;  %v2544_v19 = vmax.f32 %v272_v62, 0.0  ;;  %1274 = vmatprep.mubr.bf16.mxu1 %v548_v4  ;;  %v274_v62 = vadd.f32 %v2254_v47, %v259_v16  ;;  %vm2646_vm9 = vcmp.gt.s32.totalorder %v354_v17, 0 }
  0x32   : > { %1895 = vmatpush3.bf16.msra.mxu1 %v2034_v45  ;;  %v2566_v14 = vmax.f32 %v273_v41, 0.0  ;;  %v526_v45 = vsel %vm2425_vm14, %v502_v59, 0.0 }
  0x33   : > { %v446_v35 = vrot.slane %v2544_v19, 7  ;;  %v505_v48 = vrot.slane %v2544_v19, 1  ;;  %1896 = vmatprep.subr.bf16.mxu1 %v2036_v54  ;;  %v534_v41 = vpack.c.bf16 %v526_v45, %v525_v11  ;;  %v2046_v11 = vld [vmem:[%s2902_s3 + $0x1a8] sm:$0xff]  }
  0x34   : > { %1857 = vmatpush3.bf16.msra.mxu0 %v2037_v29  ;;  %v2557_v29 = vpack.c.bf16 %v502_v59, %v2488_v44  ;;  %v2593_v50 = vpack.c.bf16 %v2566_v14, %v2544_v19  ;;  %v507_v47 = vrot.slane %v2566_v14, 1  ;;  %v2049_v44 = vld [vmem:[%s2902_s3 + $0x130] sm:$0xff]  }
  0x35   : > { %1858 = vmatprep.subr.bf16.mxu0 %v2039_v56  ;;  %v447_v3 = vsel %vm2909_vm0, %v444_v28, %v446_v35  ;;  %v448_v56 = vrot.slane %v2566_v14, 7  ;;  %v2604_v28 = vpack.c.bf16 %v524_v7, %v523_v61 }
  0x36   : > { %1735 = vmatmul.mubr.msk.bf16.gmra.mrb[4].mxu1 %vm2908_vm6, %v2557_v29  ;;  %v469_v59 = vsel %vm2462_vm1, %v447_v3, 0.0 }
  0x37   : > { %1726 = vmatmul.mubr.msk.bf16.gmra.mrb[8].mxu0 %vm2907_vm15, %v2538_v9  ;;  %vm2942_vm15 = vcmask 1046528   ;;  %1897 = vmatpush3.bf16.msra.mxu1 %v2038_v33  ;;  %v449_v32 = vsel %vm2909_vm0, %v446_v35, %v448_v56  ;;  %vm2703_vm0 = vcmp.lt.s32.totalorder %v347_v42, 7  ;;  %v2050_v42 = vld [vmem:[%s2902_s3 + $0x1b0] sm:$0xff]  }
  0x38   : > { %1859 = vmatpush3.bf16.msra.mxu0 %v2041_v5  ;;  %v504_v60 = vsel %vm2942_vm15, %v501_v22, %v503_v58  ;;  %vm2943_vm5 = vmmov %vm2942_vm15  ;;  %1225 = vmatprep.mubr.bf16.mxu0 %v2593_v50  ;;  %v361_v22 = vand.u32 7, %v2518_v31  ;;  %v470_v54 = vsel %vm2497_vm2, %v449_v32, 0.0  ;;  %v2638_v33 = vpack.c.bf16 %v449_v32, %v447_v3  ;;  %v2051_v3 = vld [vmem:[%s2902_s3 + $0x178] sm:$0xff]  }
  0x39   : > { %1860 = vmatprep.subr.bf16.mxu0 %v2043_v34  ;;  %v506_v61 = vsel %vm2943_vm5, %v503_v58, %v505_v48  ;;  %v527_v7 = vsel %vm2510_vm8, %v504_v60, 0.0  ;;  %1898 = vmatprep.subr.bf16.mxu1 %v2040_v51  ;;  %v476_v19 = vpack.c.bf16 %v470_v54, %v469_v59  ;;  %vm2911_vm15 = vmpackc.low %vm2497_vm2, %vm2462_vm1  ;;  %v2661_v5 = vmax.f32 %v274_v62, 0.0 }
  0x3a   : > { %v528_v2 = vsel %vm2532_vm11, %v506_v61, 0.0  ;;  %vm2665_vm5 = vcmp.lt.s32.totalorder %v340_v40, 7  ;;  %v2671_v14 = vpack.c.bf16 %v506_v61, %v504_v60  ;;  %vm2675_vm6 = vcmp.gt.s32.totalorder %v361_v22, 0 }
  0x3b   : > { %v549_v35 = vrot.slane %v476_v19, 4  ;;  %v2669_v51 = vpack.c.bf16 %v528_v2, %v527_v7  ;;  %1899 = vmatpush3.bf16.msra.mxu1 %v2042_v15  ;;  %v450_v40 = vrot.slane %v2661_v5, 7  ;;  %v509_v45 = vrot.slane %v2661_v5, 1  ;;  %v2056_v19 = vld [vmem:[%s2902_s3 + $0x208] sm:$0xff]  }
  0x3c   : > { %1861 = vmatpush3.bf16.msra.mxu0 %v2045_v37  ;;  %1900 = vmatprep.subr.bf16.mxu1 %v2044_v10  ;;  %v580_v37 = vrot.slane %v2604_v28, 4  ;;  %vm2952_vm1 = vcmask 1046528   ;;  %v581_v15 = vrot.slane %v534_v41, 4  ;;  %v2055_v10 = vld [vmem:[%s2902_s3 + $0x200] sm:$0xff]   ;;  %v564_v54 = vsel %vm543_vm7, %v562_v57, %v563_v26  ;;  %v2054_v57 = vld [vmem:[%s2902_s3 + $0x1b8] sm:$0xff]  }
  0x3d   : > { %1862 = vmatprep.subr.bf16.mxu0 %v2047_v46  ;;  %v550_v39 = vsel %vm543_vm7, %v547_v20, %v549_v35  ;;  %v508_v60 = vsel %vm2952_vm1, %v505_v48, %v507_v47  ;;  %vm2955_vm13 = vmmov %vm2952_vm1  ;;  %v2053_v20 = vld [vmem:[%s2902_s3 + $0x138] sm:$0xff]   ;;  %v583_v32 = vrot.slane %v2669_v51, 4 }
  0x3e   : > { %1282 = vmatprep.mubr.bf16.mxu1 %v550_v39  ;;  %v510_v63 = vsel %vm2955_vm13, %v507_v47, %v509_v45  ;;  %v529_v13 = vsel %vm2665_vm5, %v508_v60, 0.0  ;;  %vm2956_vm1 = vmpackc.low %vm2532_vm11, %vm2510_vm8  ;;  %v582_v7 = vsel %vm543_vm7, %v580_v37, %v581_v15  ;;  %v2052_v46 = vld [vmem:[%s2902_s3 + $0x1f8] sm:$0xff]   ;;  %v567_v37 = vrot.slane %v2593_v50, 4 }
  0x3f   : > { %1729 = vmatmul.mubr.msk.bf16.gmra.mrb[12].mxu0 %vm2911_vm15, %v2638_v33  ;;  %vm2953_vm15 = vcmask 1040384   ;;  %1738 = vmatmul.mubr.msk.bf16.gmra.mrb[8].mxu1 %vm2956_vm1, %v2671_v14  ;;  %vm1739_vm13 = vmpackc.low %vm2703_vm0, %vm2665_vm5  ;;  %v2755_v41 = vpack.c.bf16 %v510_v63, %v508_v60  ;;  %v584_v47 = vsel %vm543_vm7, %v581_v15, %v583_v32  ;;  %vm2781_vm1 = vcmp.lt.s32.totalorder %v361_v22, 7 }
  0x40   : > { %1863 = vmatpush3.bf16.msra.mxu0 %v2049_v44  ;;  %v2709_v16 = vsel %vm2953_vm15, %v448_v56, %v450_v40  ;;  %vm2954_vm2 = vmmov %vm2953_vm15  ;;  %v530_v56 = vsel %vm2703_vm0, %v510_v63, 0.0  ;;  %1901 = vmatpush3.bf16.msra.mxu1 %v2046_v11  ;;  %v565_v11 = vrot.slane %v2479_v30, 4  ;;  %vm2772_vm15 = vcmp.lt.s32.totalorder %v354_v17, 7 }
  0x41   : > { %v2713_v28 = vsel %vm2954_vm2, %v450_v40, %v2182_v24  ;;  %1864 = vmatprep.subr.bf16.mxu0 %v2051_v3  ;;  %v471_v24 = vsel %vm2646_vm9, %v2709_v16, 0.0  ;;  %1902 = vmatprep.subr.bf16.mxu1 %v2048_v6  ;;  %v536_v62 = vpack.c.bf16 %v530_v56, %v529_v13  ;;  %vm2957_vm2 = vcmask 1046528   ;;  %v2058_v3 = vld [vmem:[%s2902_s3 + $0x218] sm:$0xff]  }
  0x42   : > { %v472_v48 = vsel %vm2675_vm6, %v2713_v28, 0.0  ;;  %1331 = vmatprep.mubr.bf16.mxu0 %v582_v7  ;;  %v2767_v44 = vsel %vm2957_vm2, %v509_v45, %v2192_v27  ;;  %v532_v31 = vsel %vm2781_vm1, %v2192_v27, 0.0  ;;  %v566_v17 = vsel %vm543_vm7, %v563_v26, %v565_v11  ;;  %vm2962_vm2 = vmpackc.low %vm2271_vm4, %vm2265_vm3 }
  0x43   : > { %v477_v61 = vpack.c.bf16 %v472_v48, %v471_v24  ;;  %v585_v6 = vrot.slane %v536_v62, 4  ;;  %v531_v43 = vsel %vm2772_vm15, %v2767_v44, 0.0  ;;  %v568_v26 = vsel %vm543_vm7, %v565_v11, %v567_v37  ;;  %vm2963_vm3 = vmpackc.low %vm2379_vm12, %vm2362_vm10 }
  0x44   : > { %1865 = vmatpush3.bf16.msra.mxu0 %v2053_v20  ;;  %1903 = vmatpush3.bf16.msra.mxu1 %v2050_v42  ;;  %v537_v45 = vpack.c.bf16 %v532_v31, %v531_v43  ;;  %v482_v60 = vpack.c.bf16 %v2071_v23, %v2661_v5  ;;  %v2061_v23 = vld [vmem:[%s2902_s3 + $0x230] sm:$0xff]   ;;  %vm2964_vm4 = vnez %v2931_v49  ;;  %vm2967_vm12 = vnez %v2935_v25 }
  0x45   : > { %v551_v2 = vrot.slane %v477_v61, 4  ;;  %1942 = vmatprep.subr.bf16.mxu0 %v2055_v10  ;;  %1904 = vmatprep.subr.bf16.mxu1 %v2052_v46  ;;  %v586_v22 = vsel %vm543_vm7, %v583_v32, %v585_v6  ;;  %vm2965_vm10 = vmpackc.low %vm2425_vm14, %vm2964_vm4  ;;  %v1752_v36 = vpack.c.bf16 %v2713_v28, %v2709_v16  ;;  %v1764_v49 = vpack.c.bf16 %v2192_v27, %v2767_v44 }
  0x46   : > { %v587_v39 = vrot.slane %v537_v45, 4  ;;  %vm1751_vm14 = vmpackc.low %vm2675_vm6, %vm2646_vm9 }
  0x47   : > { %v552_v8 = vsel %vm543_vm7, %v549_v35, %v551_v2  ;;  %1332 = vmatmul.mubr.bf16.vlgmr.msra.gmra.mrb[16].mxu0 %v564_v54  ;;  %v2057_v35 = vld [vmem:[%s2902_s3 + $0x210] sm:$0xff]   ;;  %vm1763_vm6 = vmpackc.low %vm2781_vm1, %vm2772_vm15 }
  0x48   : > { %1290 = vmatprep.mubr.bf16.mxu1 %v552_v8  ;;  %1943 = vmatpush3.bf16.msra.mxu0 %v2055_v10  ;;  %v588_v53 = vsel %vm543_vm7, %v585_v6, %v587_v39 }
  0x49   : > { %1339 = vmatprep.mubr.bf16.mxu0 %v584_v47  ;;  %1741 = vmatmul.mubr.msk.bf16.gmra.mrb[12].mxu1 %vm1739_vm13, %v2755_v41 }
  0x4a   : > { %1944 = vmatprep.subr.bf16.mxu0 %v2056_v19  ;;  %1905 = vmatpush3.bf16.msra.mxu1 %v2054_v57 }
  0x4b   : > { %1396 = vmatprep.mubr.bf16.mxu1 %v2337_v18  ;;  %1966 = vmatprep.subr.bf16.mxu1 %v2055_v10  ;;  %v2059_v18 = vld [vmem:[%s2902_s3 + $0x220] sm:$0xff]  }
  0x4c   : > { %1945 = vmatpush3.bf16.msra.mxu0 %v2056_v19 }
  0x4d   : > { %1946 = vmatprep.subr.bf16.mxu0 %v2057_v35 }
  0x4f   : > { %1340 = vmatmul.mubr.bf16.gmra.mrb[20].mxu0 %v566_v17 }
  0x50   : > { %1347 = vmatprep.mubr.bf16.mxu0 %v586_v22  ;;  %1947 = vmatpush3.bf16.msra.mxu0 %v2057_v35 }
  0x51   : > { %1744 = vmatmul.mubr.msk.bf16.vlgmr.msra.gmra.mrb[16].mxu1 %vm2962_vm2, %v2421_v0  ;;  %1948 = vmatprep.subr.bf16.mxu0 %v2058_v3  ;;  %v569_v0 = vrot.slane %v482_v60, 4 }
  0x52   : > { %1974 = vmatpush3.bf16.msra.mxu1 %v2055_v10  ;;  %1404 = vmatprep.mubr.bf16.mxu1 %v2479_v30 }
  0x53   : > { %1967 = vmatprep.subr.bf16.mxu1 %v2056_v19  ;;  %v570_v30 = vsel %vm543_vm7, %v567_v37, %v569_v0  ;;  %vm2966_vm7 = vnez %v2937_v55 }
  0x54   : > { %1949 = vmatpush3.bf16.msra.mxu0 %v2058_v3  ;;  %vm2968_vm2 = vmpackc.low %vm2966_vm7, %vm2967_vm12 }
  0x55   : > { %1950 = vmatprep.subr.bf16.mxu0 %v2059_v18 }
  0x56   : > { %1975 = vmatpush3.bf16.msra.mxu1 %v2056_v19 }
  0x57   : > { %1348 = vmatmul.mubr.bf16.gmra.mrb[24].mxu0 %v568_v26  ;;  %1968 = vmatprep.subr.bf16.mxu1 %v2057_v35 }
  0x58   : > { %1355 = vmatprep.mubr.bf16.mxu0 %v588_v53  ;;  %1951 = vmatpush3.bf16.msra.mxu0 %v2059_v18 }
  0x59   : > { %1747 = vmatmul.mubr.msk.bf16.gmra.mrb[20].mxu1 %vm2963_vm3, %v2538_v9  ;;  %1952 = vmatprep.subr.bf16.mxu0 %v2060_v52  ;;  %vm2969_vm3 = vmpackc.low %vm2532_vm11, %vm2510_vm8 }
  0x5a   : > { %1976 = vmatpush3.bf16.msra.mxu1 %v2057_v35  ;;  %1412 = vmatprep.mubr.bf16.mxu1 %v2593_v50 }
  0x5b   : > { %1969 = vmatprep.subr.bf16.mxu1 %v2058_v3 }
  0x5c   : > { %1953 = vmatpush3.bf16.msra.mxu0 %v2060_v52 }
  0x5d   : > { %1954 = vmatprep.subr.bf16.mxu0 %v2061_v23 }
  0x5e   : > { %1977 = vmatpush3.bf16.msra.mxu1 %v2058_v3 }
  0x5f   : > { %1356 = vmatmul.mubr.bf16.gmra.mrb[28].mxu0 %v570_v30  ;;  %1970 = vmatprep.subr.bf16.mxu1 %v2059_v18 }
  0x60   : > { %1958 = vmatprep.mubr.msk.bf16.mxu0 %vm2965_vm10, %v2557_v29  ;;  %1955 = vmatpush3.bf16.msra.mxu0 %v2061_v23 }
  0x61   : > { %1750 = vmatmul.mubr.msk.bf16.gmra.mrb[24].mxu1 %vm2968_vm2, %v2638_v33  ;;  %1956 = vmatprep.subr.bf16.mxu0 %v2062_v38 }
  0x62   : > { %1978 = vmatpush3.bf16.msra.mxu1 %v2059_v18  ;;  %1420 = vmatprep.mubr.bf16.mxu1 %v482_v60 }
  0x63   : > { %1971 = vmatprep.subr.bf16.mxu1 %v2060_v52 }
  0x64   : > { %1957 = vmatpush3.bf16.msra.mxu0 %v2062_v38 }
  0x66   : > { %1979 = vmatpush3.bf16.msra.mxu1 %v2060_v52 }
  0x67   : > { %1972 = vmatprep.subr.bf16.mxu1 %v2061_v23  ;;  %1959 = vmatmul.mubr.msk.bf16.vlgmr.msra.gmra.mrb[32].mxu0 %vm2969_vm3, %v2671_v14 }
  0x69   : > { %1753 = vmatmul.mubr.msk.bf16.gmra.mrb[28].mxu1 %vm1751_vm14, %v1752_v36 }
  0x6a   : > { %1980 = vmatpush3.bf16.msra.mxu1 %v2061_v23  ;;  %1962 = vmatprep.mubr.msk.bf16.mxu1 %vm1739_vm13, %v2755_v41 }
  0x6b   : > { %1973 = vmatprep.subr.bf16.mxu1 %v2062_v38 }
  0x6e   : > { %1981 = vmatpush3.bf16.msra.mxu1 %v2062_v38 }
  0x71   : > { %1963 = vmatmul.mubr.msk.bf16.vlgmr.msra.gmra.mrb[32].mxu1 %vm1763_vm6, %v1764_v49 }
  0xfa   : > { %v1786_v1 = vpop.f32.mrb[0].mxu0 }
  0xfb   : > { %v1787_v25 = vpop.f32.mrb[1].mxu0 }
  0xfc   : > { %v1788_v55 = vadd.f32 %v1787_v25, %v1786_v1  ;;  %v1789_v12 = vpop.f32.mrb[2].mxu0  ;;  %v1826_v29 = vpop.f32.mrb[0].mxu1 }
  0xfd   : > { %v1790_v21 = vpop.f32.mrb[3].mxu0  ;;  %v1827_v50 = vpop.f32.mrb[1].mxu1 }
  0xfe   : > { %v1791_v9 = vadd.f32 %v1790_v21, %v1789_v12  ;;  %v1828_v33 = vadd.f32 %v1827_v50, %v1826_v29  ;;  %v1829_v58 = vpop.f32.mrb[2].mxu1 }
  0xff   : > { %v1830_v34 = vpop.f32.mrb[3].mxu1 }
 0x100   : > { %v1269_v14 = vadd.f32 %v1828_v33, %v1788_v55  ;;  %v1831_v4 = vadd.f32 %v1830_v34, %v1829_v58 }
 0x102   : > { %v1792_v5 = vpop.f32.mrb[4].mxu0  ;;  %v1272_v28 = vadd.f32 %v1831_v4, %v1791_v9 }
 0x103   : > { %v1793_v27 = vpop.f32.mrb[5].mxu0 }
 0x104   : > { %v1794_v59 = vadd.f32 %v1793_v27, %v1792_v5  ;;  %v1795_v15 = vpop.f32.mrb[6].mxu0 }
 0x105   : > { %v1796_v16 = vpop.f32.mrb[7].mxu0 }
 0x106   : > { %v1797_v63 = vadd.f32 %v1796_v16, %v1795_v15 }
 0x109   : > { %v1832_v20 = vpop.f32.mrb[4].mxu1 }
 0x10a   : > { %v1798_v13 = vpop.f32.mrb[8].mxu0  ;;  %v1833_v56 = vpop.f32.mrb[5].mxu1 }
 0x10b   : > { %v1799_v42 = vpop.f32.mrb[9].mxu0  ;;  %v1834_v61 = vadd.f32 %v1833_v56, %v1832_v20  ;;  %v1835_v7 = vpop.f32.mrb[6].mxu1 }
 0x10c   : > { %v1800_v24 = vadd.f32 %v1799_v42, %v1798_v13  ;;  %v1801_v48 = vpop.f32.mrb[10].mxu0  ;;  %v1836_v46 = vpop.f32.mrb[7].mxu1 }
 0x10d   : > { %v1802_v32 = vpop.f32.mrb[11].mxu0  ;;  %v1277_v54 = vadd.f32 %v1834_v61, %v1794_v59  ;;  %v1837_v2 = vadd.f32 %v1836_v46, %v1835_v7 }
 0x10e   : > { %v1803_v10 = vadd.f32 %v1802_v32, %v1801_v48 }
 0x10f   : > { %v1280_v62 = vadd.f32 %v1837_v2, %v1797_v63 }
 0x112   : > { %v1804_v41 = vpop.f32.mrb[12].mxu0  ;;  %v1838_v57 = vpop.f32.mrb[8].mxu1 }
 0x113   : > { %v1805_v19 = vpop.f32.mrb[13].mxu0  ;;  %v1839_v11 = vpop.f32.mrb[9].mxu1 }
 0x114   : > { %v1806_v47 = vadd.f32 %v1805_v19, %v1804_v41  ;;  %v1807_v8 = vpop.f32.mrb[14].mxu0  ;;  %v1840_v35 = vadd.f32 %v1839_v11, %v1838_v57  ;;  %v1841_v6 = vpop.f32.mrb[10].mxu1 }
 0x115   : > { %v1808_v44 = vpop.f32.mrb[15].mxu0  ;;  %v1842_v40 = vpop.f32.mrb[11].mxu1 }
 0x116   : > { %v1809_v51 = vadd.f32 %v1808_v44, %v1807_v8  ;;  %v1285_v43 = vadd.f32 %v1840_v35, %v1800_v24  ;;  %v1843_v31 = vadd.f32 %v1842_v40, %v1841_v6 }
 0x118   : > { %v1288_v22 = vadd.f32 %v1843_v31, %v1803_v10 }
 0x11a   : > { %v1866_v17 = vpop.f32.mrb[16].mxu0 }
 0x11b   : > { %v1867_v45 = vpop.f32.mrb[17].mxu0 }
 0x11c   : > { %v1868_v3 = vadd.f32 %v1867_v45, %v1866_v17  ;;  %v1869_v37 = vpop.f32.mrb[18].mxu0  ;;  %v1844_v39 = vpop.f32.mrb[12].mxu1 }
 0x11d   : > { %v1870_v18 = vpop.f32.mrb[19].mxu0  ;;  %v1845_v26 = vpop.f32.mrb[13].mxu1 }
 0x11e   : > { %v1334_v60 = vadd.f32 %v1868_v3, %v1269_v14  ;;  %v1871_v53 = vadd.f32 %v1870_v18, %v1869_v37  ;;  %v1846_v52 = vadd.f32 %v1845_v26, %v1844_v39  ;;  %v1847_v0 = vpop.f32.mrb[14].mxu1 }
 0x11f   : > { %v1848_v23 = vpop.f32.mrb[15].mxu1 }
 0x120   : > { %v1337_v30 = vadd.f32 %v1871_v53, %v1272_v28  ;;  %v1293_v38 = vadd.f32 %v1846_v52, %v1806_v47  ;;  %v1849_v36 = vadd.f32 %v1848_v23, %v1847_v0 }
 0x122   : > { %v1872_v49 = vpop.f32.mrb[20].mxu0  ;;  %v1296_v1 = vadd.f32 %v1849_v36, %v1809_v51 }
 0x123   : > { %v1873_v25 = vpop.f32.mrb[21].mxu0 }
 0x124   : > { %v1874_v55 = vadd.f32 %v1873_v25, %v1872_v49  ;;  %v1875_v12 = vpop.f32.mrb[22].mxu0  ;;  %v1906_v21 = vpop.f32.mrb[16].mxu1 }
 0x125   : > { %v1876_v9 = vpop.f32.mrb[23].mxu0  ;;  %v1907_v29 = vpop.f32.mrb[17].mxu1 }
 0x126   : > { %v1342_v50 = vadd.f32 %v1874_v55, %v1277_v54  ;;  %v1877_v33 = vadd.f32 %v1876_v9, %v1875_v12  ;;  %v1908_v58 = vadd.f32 %v1907_v29, %v1906_v21  ;;  %v1909_v5 = vpop.f32.mrb[18].mxu1 }
 0x127   : > { %v1910_v34 = vpop.f32.mrb[19].mxu1 }
 0x128   : > { %v1345_v27 = vadd.f32 %v1877_v33, %v1280_v62  ;;  %v1911_v14 = vadd.f32 %v1910_v34, %v1909_v5  ;;  %v1399_v4 = vadd.f32 %v1908_v58, %v1334_v60 }
 0x12a   : > { %v1878_v59 = vpop.f32.mrb[24].mxu0  ;;  %v1402_v16 = vadd.f32 %v1911_v14, %v1337_v30 }
 0x12b   : > { %v1879_v15 = vpop.f32.mrb[25].mxu0 }
 0x12c   : > { %v1880_v28 = vadd.f32 %v1879_v15, %v1878_v59  ;;  %v1881_v63 = vpop.f32.mrb[26].mxu0  ;;  %v1912_v13 = vpop.f32.mrb[20].mxu1 }
 0x12d   : > { %v1882_v42 = vpop.f32.mrb[27].mxu0  ;;  %v1913_v20 = vpop.f32.mrb[21].mxu1 }
 0x12e   : > { %v1350_v24 = vadd.f32 %v1880_v28, %v1285_v43  ;;  %v1883_v48 = vadd.f32 %v1882_v42, %v1881_v63  ;;  %v1914_v56 = vadd.f32 %v1913_v20, %v1912_v13  ;;  %v1915_v32 = vpop.f32.mrb[22].mxu1 }
 0x12f   : > { %v1916_v61 = vpop.f32.mrb[23].mxu1 }
 0x130   : > { %v1353_v7 = vadd.f32 %v1883_v48, %v1288_v22  ;;  %v1917_v10 = vadd.f32 %v1916_v61, %v1915_v32  ;;  %v1407_v46 = vadd.f32 %v1914_v56, %v1342_v50 }
 0x132   : > { %v1884_v54 = vpop.f32.mrb[28].mxu0  ;;  %v1410_v62 = vadd.f32 %v1917_v10, %v1345_v27 }
 0x133   : > { %v1885_v2 = vpop.f32.mrb[29].mxu0 }
 0x134   : > { %v1886_v41 = vadd.f32 %v1885_v2, %v1884_v54  ;;  %v1887_v19 = vpop.f32.mrb[30].mxu0  ;;  %v1918_v47 = vpop.f32.mrb[24].mxu1 }
 0x135   : > { %v1888_v8 = vpop.f32.mrb[31].mxu0  ;;  %v1919_v57 = vpop.f32.mrb[25].mxu1 }
 0x136   : > { %v1358_v44 = vadd.f32 %v1886_v41, %v1293_v38  ;;  %v1889_v11 = vadd.f32 %v1888_v8, %v1887_v19  ;;  %v1920_v51 = vadd.f32 %v1919_v57, %v1918_v47  ;;  %v1921_v35 = vpop.f32.mrb[26].mxu1 }
 0x137   : > { %v1922_v6 = vpop.f32.mrb[27].mxu1 }
 0x138   : > { %v1361_v40 = vadd.f32 %v1889_v11, %v1296_v1  ;;  %v1923_v43 = vadd.f32 %v1922_v6, %v1921_v35  ;;  %v1415_v31 = vadd.f32 %v1920_v51, %v1350_v24 }
 0x13a   : > { %v1960_v17 = vpop.f32.mrb[32].mxu0  ;;  %v1418_v22 = vadd.f32 %v1923_v43, %v1353_v7 }
 0x13b   : > { %v1472_v45 = vadd.f32 %v1960_v17, %v1407_v46  ;;  %v1463_v3 = vpop.f32.mrb[33].mxu0 }
 0x13c   : > { %v1924_v37 = vpop.f32.mrb[28].mxu1  ;;  %v1464_v39 = vadd.f32 %v1463_v3, %v1399_v4  ;;  %v1961_v18 = vpop.f32.mrb[34].mxu0 }
 0x13d   : > { %v1925_v26 = vpop.f32.mrb[29].mxu1  ;;  %1496 = vst [vmem:[%s2878_s20 + $0x10] sm:$0xff] %v1472_v45  ;;  %v1475_v60 = vadd.f32 %v1961_v18, %v1410_v62  ;;  %v1466_v53 = vpop.f32.mrb[35].mxu0 }
 0x13e   : > { %v1926_v52 = vadd.f32 %v1925_v26, %v1924_v37  ;;  %v1927_v0 = vpop.f32.mrb[30].mxu1  ;;  %1494 = vst [vmem:[%s2878_s20] sm:$0xff] %v1464_v39  ;;  %v1467_v23 = vadd.f32 %v1466_v53, %v1402_v16 }
 0x13f   : > { %v1928_v30 = vpop.f32.mrb[31].mxu1  ;;  %1497 = vst [vmem:[%s2878_s20 + $0x18] sm:$0xff] %v1475_v60 }
 0x140   : > { %v1929_v38 = vadd.f32 %v1928_v30, %v1927_v0  ;;  %v1423_v36 = vadd.f32 %v1926_v52, %v1358_v44  ;;  %1495 = vst [vmem:[%s2878_s20 + $0x8] sm:$0xff] %v1467_v23  ;;  %v1502_v49 = vadd.f32 %v1467_v23, %v1464_v39 }
 0x142   : > { %v1426_v1 = vadd.f32 %v1929_v38, %v1361_v40  ;;  %v1503_v25 = vadd.f32 %v1502_v49, %v1472_v45 }
 0x144   : > { %v1964_v55 = vpop.f32.mrb[32].mxu1  ;;  %v1504_v12 = vadd.f32 %v1503_v25, %v1475_v60 }
 0x145   : > { %v1488_v21 = vadd.f32 %v1964_v55, %v1423_v36  ;;  %v1479_v9 = vpop.f32.mrb[33].mxu1 }
 0x146   : > { %v1480_v29 = vadd.f32 %v1479_v9, %v1415_v31  ;;  %v1965_v50 = vpop.f32.mrb[34].mxu1 }
 0x147   : > { %1500 = vst [vmem:[%s2878_s20 + $0x30] sm:$0xff] %v1488_v21  ;;  %v1491_v33 = vadd.f32 %v1965_v50, %v1426_v1  ;;  %v1482_v58 = vpop.f32.mrb[35].mxu1 }
 0x148   : > { %1498 = vst [vmem:[%s2878_s20 + $0x20] sm:$0xff] %v1480_v29  ;;  %v1483_v5 = vadd.f32 %v1482_v58, %v1418_v22  ;;  %v1505_v34 = vadd.f32 %v1504_v12, %v1480_v29 }
 0x149   : > { %1501 = vst [vmem:[%s2878_s20 + $0x38] sm:$0xff] %v1491_v33 }
 0x14a   : > { %1499 = vst [vmem:[%s2878_s20 + $0x28] sm:$0xff] %v1483_v5  ;;  %v1506_v27 = vadd.f32 %v1505_v34, %v1483_v5 }
 0x14c   : > { %v1507_v14 = vadd.f32 %v1506_v27, %v1488_v21 }
 0x14e   : > { %v1508_v4 = vadd.f32 %v1507_v14, %v1491_v33 }
 0x150   : > { %v1509_v59 = vrot.slane %v1508_v4, 4 }
 0x152   : > { %v1510_v15 = vadd.f32 %v1509_v59, %v1508_v4 }
 0x154   : > { %v1511_v16 = vrot.slane %v1510_v15, 2 }
 0x156   : > { %v1512_v28 = vadd.f32 %v1511_v16, %v1510_v15 }
 0x158   : > { %v1513_v63 = vrot.slane %v1512_v28, 1 }
 0x15a   : > { %v1514_v13 = vadd.f32 %v1513_v63, %v1512_v28 }
 0x15c   : > { %v1516_v42 = vmul.f32 0.015625, %v1514_v13 }
 0x15e   : > { %v1517_v20 = vsub.f32 %v1464_v39, %v1516_v42  ;;  %v1518_v24 = vsub.f32 %v1467_v23, %v1516_v42  ;;  %v1519_v48 = vsub.f32 %v1472_v45, %v1516_v42  ;;  %v1520_v56 = vsub.f32 %v1475_v60, %v1516_v42  ;;  %1546 = vst [vmem:[%s2892_s23] sm:$0x1] %v1516_v42 }
 0x15f   : > { %v1521_v32 = vsub.f32 %v1480_v29, %v1516_v42  ;;  %v1522_v61 = vsub.f32 %v1483_v5, %v1516_v42  ;;  %v1523_v7 = vsub.f32 %v1488_v21, %v1516_v42  ;;  %v1524_v10 = vsub.f32 %v1491_v33, %v1516_v42 }
 0x160   : > { %v1525_v46 = vmul.f32 %v1517_v20, %v1517_v20  ;;  %v1526_v54 = vmul.f32 %v1518_v24, %v1518_v24  ;;  %v1527_v2 = vmul.f32 %v1519_v48, %v1519_v48  ;;  %v1528_v41 = vmul.f32 %v1520_v56, %v1520_v56 }
 0x161   : > { %v1529_v47 = vmul.f32 %v1521_v32, %v1521_v32  ;;  %v1530_v57 = vmul.f32 %v1522_v61, %v1522_v61  ;;  %v1531_v11 = vmul.f32 %v1523_v7, %v1523_v7  ;;  %v1532_v35 = vmul.f32 %v1524_v10, %v1524_v10 }
 0x162   : > { %v1533_v62 = vadd.f32 %v1526_v54, %v1525_v46 }
 0x164   : > { %v1534_v19 = vadd.f32 %v1533_v62, %v1527_v2 }
 0x166   : > { %v1535_v8 = vadd.f32 %v1534_v19, %v1528_v41 }
 0x168   : > { %v1536_v44 = vadd.f32 %v1535_v8, %v1529_v47 }
 0x16a   : > { %v1537_v51 = vadd.f32 %v1536_v44, %v1530_v57 }
 0x16c   : > { %v1538_v6 = vadd.f32 %v1537_v51, %v1531_v11 }
 0x16e   : > { %v1539_v40 = vadd.f32 %v1538_v6, %v1532_v35 }
 0x170   : > { %v1540_v43 = vrot.slane %v1539_v40, 4 }
 0x172   : > { %v1541_v31 = vadd.f32 %v1540_v43, %v1539_v40 }
 0x174   : > { %v1542_v17 = vrot.slane %v1541_v31, 2 }
 0x176   : > { %v1543_v22 = vadd.f32 %v1542_v17, %v1541_v31 }
 0x178   : > { %v1544_v45 = vrot.slane %v1543_v22, 1 }
 0x17a   : > { %v1545_v3 = vadd.f32 %v1544_v45, %v1543_v22 }
 0x17c   : > { %1547 = vst [vmem:[%s2892_s23 + $0x1] sm:$0x1] %v1545_v3 }
 0x17d PF: > { %s16_s18 = sadd.s32 1, %s2069_s18  }
 0x17e   : > { %p13_p4 = scmp.ge.s32.totalorder %s16_s18, 4  }
 0x180   :  { %15 = sbr.rel (!%p13_p4) target bundleno = 1 (0x1), region = 78 }

</bundles_post_ra>
